<compile_context>
chip_gen: v5e
topology: v5e:2x2
jax: 0.10.0
libtpu: 0.0.40
codegen_flags: <defaults>
</compile_context>

<pallas_src>
import math

import jax
import jax.numpy as jnp
from jax import lax
from jax.experimental import pallas as pl
from jax.experimental.pallas import tpu as pltpu


# ----------------------------------------------------------------------------
# Model configuration (small deterministic BERT + SRL head)
# ----------------------------------------------------------------------------
HIDDEN = 32
NUM_HEADS = 2
HEAD_DIM = HIDDEN // NUM_HEADS
INTERMEDIATE = 64
NUM_LAYERS = 2
VOCAB = 100
MAX_POS = 16
TYPE_VOCAB = 2
NUM_LABELS = 8
FC_PAD = 128          # lane-dense classifier output width (sliced to NUM_LABELS outside)
LN_EPS = 1e-12

# Packed small-parameter slab layout: one [PARAM_ROWS, 128] f32 tensor holds every
# bias / LayerNorm gamma+beta / fc bias -> a single up-front DMA instead of ~16.
ROW_EMB_LN_G = 0
ROW_EMB_LN_B = 1
ROW_FC_B = 2
ROW_LAYER0 = 3
ROWS_PER_LAYER = 8    # bqkv, bo, b1, b2, ln1_g, ln1_b, ln2_g, ln2_b
PARAM_ROWS = 24       # 3 + 8*NUM_LAYERS = 19 rows used, padded to a sublane multiple


# ----------------------------------------------------------------------------
# Shared math helpers (used by kernel and reference)
# ----------------------------------------------------------------------------
def _gelu(x):
    # tanh-approximation GELU (BERT activation)
    return 0.5 * x * (1.0 + jnp.tanh(0.7978845608028654 * (x + 0.044715 * x * x * x)))


def _layernorm(x, g, b):
    inv_n = 1.0 / x.shape[-1]
    mu = jnp.sum(x, axis=-1, keepdims=True) * inv_n
    xc = x - mu
    var = jnp.sum(xc * xc, axis=-1, keepdims=True) * inv_n
    return xc * lax.rsqrt(var + LN_EPS) * g + b


def _split_heads(m):
    """[S, HIDDEN] -> [NUM_HEADS, S, HEAD_DIM] (lane slices stacked on a leading axis)."""
    parts = [m[:, h * HEAD_DIM:(h + 1) * HEAD_DIM][None, :, :] for h in range(NUM_HEADS)]
    return jnp.concatenate(parts, axis=0)


# ----------------------------------------------------------------------------
# Fused whole-model Pallas kernel — one grid step == one batch element
# ----------------------------------------------------------------------------
def _bert_srl_kernel(emb_ref, mask_ref, slab_ref, w_qkvo_ref, w_ffn_ref, o_ref):
    slab = slab_ref[...]                                     # [PARAM_ROWS, 128] f32
    mask = mask_ref[0]                                       # [1, S] additive bias (f32)

    def prow(row, width):
        return slab[row:row + 1, 0:width]                    # [1, width] f32

    # Embedding LayerNorm.
    x = _layernorm(emb_ref[0], prow(ROW_EMB_LN_G, HIDDEN), prow(ROW_EMB_LN_B, HIDDEN))

    # Encoder layers (static unroll, weights indexed by static layer id).
    for li in range(NUM_LAYERS):
        base = ROW_LAYER0 + li * ROWS_PER_LAYER
        w_qkvo = w_qkvo_ref[li]                              # [H, 128] bf16: [Wq|Wk|Wv|Wo]
        wqkv = w_qkvo[:, 0:3 * HIDDEN]
        wo = w_qkvo[:, 3 * HIDDEN:4 * HIDDEN]

        # Fused QKV projection (1/sqrt(head_dim) is pre-folded into the Q columns).
        qkv = jnp.dot(x.astype(jnp.bfloat16), wqkv,
                      preferred_element_type=jnp.float32) + prow(base + 0, 3 * HIDDEN)

        # Batched attention over heads: [nH, S, d] operands, one dot_general each.
        qh = _split_heads(qkv[:, 0:HIDDEN]).astype(jnp.bfloat16)
        kh = _split_heads(qkv[:, HIDDEN:2 * HIDDEN]).astype(jnp.bfloat16)
        vh = _split_heads(qkv[:, 2 * HIDDEN:3 * HIDDEN]).astype(jnp.bfloat16)

        s = lax.dot_general(qh, kh, (((2,), (2,)), ((0,), (0,))),
                            preferred_element_type=jnp.float32)        # [nH, S, S] f32
        s = s + mask                                                    # broadcast over keys
        s = s - jnp.max(s, axis=-1, keepdims=True)
        p = jnp.exp(s)
        p = p * pl.reciprocal(jnp.sum(p, axis=-1, keepdims=True), approx=True)
        ctx = lax.dot_general(p.astype(jnp.bfloat16), vh, (((2,), (1,)), ((0,), (0,))),
                              preferred_element_type=jnp.float32)      # [nH, S, d] f32

        # Merge heads (contiguous lane slices) and do ONE output projection matmul.
        ctx = jnp.concatenate([ctx[h] for h in range(NUM_HEADS)], axis=-1)   # [S, H]
        attn = jnp.dot(ctx.astype(jnp.bfloat16), wo,
                       preferred_element_type=jnp.float32) + prow(base + 1, HIDDEN)
        x = _layernorm(x + attn, prow(base + 4, HIDDEN), prow(base + 5, HIDDEN))

        # FFN.
        w_ffn = w_ffn_ref[li]                                # [H+I, 128] bf16
        w1 = w_ffn[0:HIDDEN, 0:INTERMEDIATE]
        w2 = w_ffn[HIDDEN:HIDDEN + INTERMEDIATE, 0:HIDDEN]
        ff = _gelu(jnp.dot(x.astype(jnp.bfloat16), w1,
                           preferred_element_type=jnp.float32) + prow(base + 2, INTERMEDIATE))
        ffn = jnp.dot(ff.astype(jnp.bfloat16), w2,
                      preferred_element_type=jnp.float32) + prow(base + 3, HIDDEN)
        x = _layernorm(x + ffn, prow(base + 6, HIDDEN), prow(base + 7, HIDDEN))

    # sequence_output = dropout(last_hidden_state) -> identity at inference.
    # logits = fc(sequence_output), emitted as one lane-dense [S, 128] slab.
    fc_w = w_qkvo_ref[NUM_LAYERS]                            # [H, 128] bf16 (zero-padded)
    o_ref[0] = (jnp.dot(x.astype(jnp.bfloat16), fc_w,
                        preferred_element_type=jnp.float32) + prow(ROW_FC_B, FC_PAD))


# ----------------------------------------------------------------------------
# Parameters (pre-packed so the kernel sees 3 weight/param DMAs total)
# ----------------------------------------------------------------------------
def init_params(key):
    def nrm(k, shape, scale=0.02):
        return jax.random.normal(k, shape, dtype=jnp.float32) * scale

    ks = jax.random.split(key, 13)
    word_emb = nrm(ks[0], (VOCAB, HIDDEN))
    pos_emb = nrm(ks[1], (MAX_POS, HIDDEN))
    type_emb = nrm(ks[2], (TYPE_VOCAB, HIDDEN))

    wqkv = nrm(ks[3], (NUM_LAYERS, HIDDEN, 3 * HIDDEN))
    bqkv = nrm(ks[4], (NUM_LAYERS, 3 * HIDDEN))
    wo = nrm(ks[5], (NUM_LAYERS, HIDDEN, HIDDEN))
    bo = nrm(ks[6], (NUM_LAYERS, HIDDEN))
    w1 = nrm(ks[7], (NUM_LAYERS, HIDDEN, INTERMEDIATE))
    b1 = nrm(ks[8], (NUM_LAYERS, INTERMEDIATE))
    w2 = nrm(ks[9], (NUM_LAYERS, INTERMEDIATE, HIDDEN))
    b2 = nrm(ks[10], (NUM_LAYERS, HIDDEN))
    fc_w = nrm(ks[11], (HIDDEN, NUM_LABELS), scale=1.0 / math.sqrt(HIDDEN))
    fc_b = nrm(ks[12], (NUM_LABELS,))

    # Fold the 1/sqrt(head_dim) attention scale into the Q projection (weight + bias).
    q_scale = 1.0 / math.sqrt(HEAD_DIM)
    wqkv = wqkv.at[:, :, :HIDDEN].multiply(q_scale)
    bqkv = bqkv.at[:, :HIDDEN].multiply(q_scale)

    # Packed small-parameter slab: one [PARAM_ROWS, 128] f32 DMA.
    slab = jnp.zeros((PARAM_ROWS, 128), jnp.float32)
    slab = slab.at[ROW_EMB_LN_G, :HIDDEN].set(1.0)
    slab = slab.at[ROW_FC_B, :NUM_LABELS].set(fc_b)
    for li in range(NUM_LAYERS):
        base = ROW_LAYER0 + li * ROWS_PER_LAYER
        slab = slab.at[base + 0, :3 * HIDDEN].set(bqkv[li])
        slab = slab.at[base + 1, :HIDDEN].set(bo[li])
        slab = slab.at[base + 2, :INTERMEDIATE].set(b1[li])
        slab = slab.at[base + 3, :HIDDEN].set(b2[li])
        slab = slab.at[base + 4, :HIDDEN].set(1.0)   # ln1 gamma (beta stays 0)
        slab = slab.at[base + 6, :HIDDEN].set(1.0)   # ln2 gamma (beta stays 0)

    # Lane-dense bf16 weight slabs.
    w_qkvo_fc = jnp.zeros((NUM_LAYERS + 1, HIDDEN, 128), jnp.float32)
    w_qkvo_fc = w_qkvo_fc.at[:NUM_LAYERS, :, :3 * HIDDEN].set(wqkv)
    w_qkvo_fc = w_qkvo_fc.at[:NUM_LAYERS, :, 3 * HIDDEN:4 * HIDDEN].set(wo)
    w_qkvo_fc = w_qkvo_fc.at[NUM_LAYERS, :, :NUM_LABELS].set(fc_w)   # padded classifier

    w_ffn = jnp.zeros((NUM_LAYERS, HIDDEN + INTERMEDIATE, 128), jnp.float32)
    w_ffn = w_ffn.at[:, :HIDDEN, :INTERMEDIATE].set(w1)
    w_ffn = w_ffn.at[:, HIDDEN:, :HIDDEN].set(w2)

    return {
        "word_emb": word_emb,
        "pos_emb": pos_emb,
        "type_emb": type_emb,
        "slab": slab,
        "w_qkvo_fc": w_qkvo_fc.astype(jnp.bfloat16),
        "w_ffn": w_ffn.astype(jnp.bfloat16),
    }


# ----------------------------------------------------------------------------
# Forward (matches the PyTorch Bert_SRL.forward signature / semantics)
# ----------------------------------------------------------------------------
def bert_srl_forward(params, input_ids, spans=None, attention_mask=None,
                     token_type_ids=None, position_ids=None):
    # `spans` is accepted (as in the PyTorch signature) but unused by the forward.
    del spans
    B, S = input_ids.shape
    if attention_mask is None:
        attention_mask = jnp.ones((B, S), jnp.int32)
    if token_type_ids is None:
        token_type_ids = jnp.zeros((B, S), jnp.int32)
    if position_ids is None:
        position_ids = jnp.broadcast_to(jnp.arange(S, dtype=jnp.int32)[None, :], (B, S))

    # Embedding gathers stay in XLA (data-dependent table lookups).
    emb = (params["word_emb"][input_ids]
           + params["pos_emb"][position_ids]
           + params["type_emb"][token_type_ids])                       # [B, S, H] f32
    # Additive attention-mask bias: 0 where attended, -1e9 where masked.
    mask_bias = ((1.0 - attention_mask.astype(jnp.float32)) * -1e9)[:, None, :]  # [B,1,S]

    logits_pad = pl.pallas_call(
        _bert_srl_kernel,
        out_shape=jax.ShapeDtypeStruct((B, S, FC_PAD), jnp.float32),
        grid=(B,),
        in_specs=[
            pl.BlockSpec((1, S, HIDDEN), lambda b: (b, 0, 0)),                    # emb
            pl.BlockSpec((1, 1, S), lambda b: (b, 0, 0)),                         # mask bias
            pl.BlockSpec((PARAM_ROWS, 128), lambda b: (0, 0)),                    # param slab
            pl.BlockSpec((NUM_LAYERS + 1, HIDDEN, 128), lambda b: (0, 0, 0)),     # qkvo+fc
            pl.BlockSpec((NUM_LAYERS, HIDDEN + INTERMEDIATE, 128), lambda b: (0, 0, 0)),
        ],
        out_specs=pl.BlockSpec((1, S, FC_PAD), lambda b: (b, 0, 0)),
        compiler_params=pltpu.CompilerParams(
            dimension_semantics=("parallel",),     # batch shards across TCs on v7x
            vmem_limit_bytes=32 * 1024 * 1024,
        ),
    )(emb, mask_bias, params["slab"], params["w_qkvo_fc"], params["w_ffn"])

    return logits_pad[:, :, :NUM_LABELS]


# ----------------------------------------------------------------------------
# Pure-JAX reference (same bf16-rounded weights, exact softmax) for validation
# ----------------------------------------------------------------------------
def bert_srl_reference(params, input_ids, attention_mask, token_type_ids=None,
                       position_ids=None):
    B, S = input_ids.shape
    if token_type_ids is None:
        token_type_ids = jnp.zeros((B, S), jnp.int32)
    if position_ids is None:
        position_ids = jnp.broadcast_to(jnp.arange(S, dtype=jnp.int32)[None, :], (B, S))

    emb = (params["word_emb"][input_ids]
           + params["pos_emb"][position_ids]
           + params["type_emb"][token_type_ids])
    slab = params["slab"]
    wq_all = params["w_qkvo_fc"].astype(jnp.float32)
    wf_all = params["w_ffn"].astype(jnp.float32)
    mask_bias = ((1.0 - attention_mask.astype(jnp.float32)) * -1e9)[:, None, None, :]

    def prow(row, width):
        return slab[row, :width]

    x = _layernorm(emb, prow(ROW_EMB_LN_G, HIDDEN), prow(ROW_EMB_LN_B, HIDDEN))
    for li in range(NUM_LAYERS):
        base = ROW_LAYER0 + li * ROWS_PER_LAYER
        wqkv = wq_all[li, :, :3 * HIDDEN]
        wo = wq_all[li, :, 3 * HIDDEN:4 * HIDDEN]
        qkv = x @ wqkv + prow(base + 0, 3 * HIDDEN)
        q = qkv[..., 0:HIDDEN].reshape(B, S, NUM_HEADS, HEAD_DIM).transpose(0, 2, 1, 3)
        k = qkv[..., HIDDEN:2 * HIDDEN].reshape(B, S, NUM_HEADS, HEAD_DIM).transpose(0, 2, 1, 3)
        v = qkv[..., 2 * HIDDEN:3 * HIDDEN].reshape(B, S, NUM_HEADS, HEAD_DIM).transpose(0, 2, 1, 3)
        s = jnp.einsum("bhqd,bhkd->bhqk", q, k) + mask_bias
        p = jax.nn.softmax(s, axis=-1)
        ctx = jnp.einsum("bhqk,bhkd->bhqd", p, v).transpose(0, 2, 1, 3).reshape(B, S, HIDDEN)
        attn = ctx @ wo + prow(base + 1, HIDDEN)
        x = _layernorm(x + attn, prow(base + 4, HIDDEN), prow(base + 5, HIDDEN))
        w1 = wf_all[li, :HIDDEN, :INTERMEDIATE]
        w2 = wf_all[li, HIDDEN:, :HIDDEN]
        ff = _gelu(x @ w1 + prow(base + 2, INTERMEDIATE))
        x = _layernorm(x + ff @ w2 + prow(base + 3, HIDDEN),
                       prow(base + 6, HIDDEN), prow(base + 7, HIDDEN))
    fc_w = wq_all[NUM_LAYERS, :, :NUM_LABELS]
    return x @ fc_w + prow(ROW_FC_B, NUM_LABELS)


if __name__ == "__main__":
    key = jax.random.PRNGKey(0)
    pkey, dkey = jax.random.split(key)
    params = init_params(pkey)

    B, S = 2, 8
    input_ids = jax.random.randint(dkey, (B, S), 0, VOCAB, dtype=jnp.int32)
    attention_mask = jnp.ones((B, S), jnp.int32)
    spans = jnp.zeros((B, S), jnp.int32)  # unused by forward, mirrors PyTorch signature

    logits = bert_srl_forward(params, input_ids, spans=spans,
                              attention_mask=attention_mask)
    logits = jax.block_until_ready(logits)

    assert logits.shape == (B, S, NUM_LABELS), logits.shape
    assert logits.dtype == jnp.float32
    assert bool(jnp.all(jnp.isfinite(logits)))

    ref = bert_srl_reference(params, input_ids, attention_mask)
    max_diff = float(jnp.max(jnp.abs(logits - ref)))
    assert max_diff < 0.15, f"kernel vs reference max|diff|={max_diff}"

    print("KERNEL_OK")
</pallas_src>

<mosaic_0001>
module attributes {stable_mosaic.version = 11 : i64} {
  func.func @_bert_srl_kernel(%arg0: i32, %arg1: memref<1x8x32xf32, #tpu.memory_space<vmem>>, %arg2: memref<1x1x8xf32, #tpu.memory_space<vmem>>, %arg3: memref<24x128xf32, #tpu.memory_space<vmem>>, %arg4: memref<3x32x128xbf16, #tpu.memory_space<vmem>>, %arg5: memref<2x96x128xbf16, #tpu.memory_space<vmem>>, %arg6: memref<1x8x128xf32, #tpu.memory_space<vmem>>) attributes {dimension_semantics = [#tpu.dimension_semantics<parallel>], iteration_bounds = array<i64: 2>, scalar_prefetch = 0 : i64, scratch_operands = 0 : i64, tpu.core_type = #tpu.core_type<tc>, window_params = [{transform_indices = @transform_0, window_bounds = array<i64: 1, 8, 32>}, {transform_indices = @transform_1, window_bounds = array<i64: 1, 1, 8>}, {pipeline_mode = #tpu.pipeline_mode<synchronous>, transform_indices = @transform_2, window_bounds = array<i64: 24, 128>}, {pipeline_mode = #tpu.pipeline_mode<synchronous>, transform_indices = @transform_3, window_bounds = array<i64: 3, 32, 128>}, {pipeline_mode = #tpu.pipeline_mode<synchronous>, transform_indices = @transform_4, window_bounds = array<i64: 2, 96, 128>}, {transform_indices = @transform_5, window_bounds = array<i64: 1, 8, 128>}]} {
    %c0 = arith.constant 0 : index
    %c0_0 = arith.constant 0 : index
    %0 = vector.load %arg3[%c0, %c0_0] : memref<24x128xf32, #tpu.memory_space<vmem>>, vector<24x128xf32>
    %c0_1 = arith.constant 0 : index
    %c0_2 = arith.constant 0 : index
    %c0_3 = arith.constant 0 : index
    %1 = vector.load %arg2[%c0_1, %c0_2, %c0_3] : memref<1x1x8xf32, #tpu.memory_space<vmem>>, vector<1x1x8xf32>
    %2 = vector.shape_cast %1 : vector<1x1x8xf32> to vector<1x8xf32>
    %c0_4 = arith.constant 0 : index
    %c0_5 = arith.constant 0 : index
    %c0_6 = arith.constant 0 : index
    %3 = vector.load %arg1[%c0_4, %c0_5, %c0_6] : memref<1x8x32xf32, #tpu.memory_space<vmem>>, vector<1x8x32xf32>
    %4 = vector.shape_cast %3 : vector<1x8x32xf32> to vector<8x32xf32>
    %5 = vector.extract_strided_slice %0 {offsets = [0, 0], sizes = [1, 32], strides = [1, 1]} : vector<24x128xf32> to vector<1x32xf32>
    %6 = vector.extract_strided_slice %0 {offsets = [1, 0], sizes = [1, 32], strides = [1, 1]} : vector<24x128xf32> to vector<1x32xf32>
    %cst = arith.constant dense<0.000000e+00> : vector<8xf32>
    %7 = vector.multi_reduction <add>, %4, %cst [1] : vector<8x32xf32> to vector<8xf32>
    %8 = vector.shape_cast %7 : vector<8xf32> to vector<8x1xf32>
    %cst_7 = arith.constant 3.125000e-02 : f32
    %9 = vector.broadcast %cst_7 : f32 to vector<8x1xf32>
    %10 = arith.mulf %8, %9 : vector<8x1xf32>
    %11 = vector.broadcast %10 : vector<8x1xf32> to vector<8x32xf32>
    %12 = arith.subf %4, %11 : vector<8x32xf32>
    %13 = arith.mulf %12, %12 : vector<8x32xf32>
    %cst_8 = arith.constant dense<0.000000e+00> : vector<8xf32>
    %14 = vector.multi_reduction <add>, %13, %cst_8 [1] : vector<8x32xf32> to vector<8xf32>
    %15 = vector.shape_cast %14 : vector<8xf32> to vector<8x1xf32>
    %cst_9 = arith.constant 3.125000e-02 : f32
    %16 = vector.broadcast %cst_9 : f32 to vector<8x1xf32>
    %17 = arith.mulf %15, %16 : vector<8x1xf32>
    %cst_10 = arith.constant 9.99999996E-13 : f32
    %18 = vector.broadcast %cst_10 : f32 to vector<8x1xf32>
    %19 = arith.addf %17, %18 : vector<8x1xf32>
    %20 = math.rsqrt %19 : vector<8x1xf32>
    %21 = vector.broadcast %20 : vector<8x1xf32> to vector<8x32xf32>
    %22 = arith.mulf %12, %21 : vector<8x32xf32>
    %23 = vector.broadcast %5 : vector<1x32xf32> to vector<8x32xf32>
    %24 = arith.mulf %22, %23 : vector<8x32xf32>
    %25 = vector.broadcast %6 : vector<1x32xf32> to vector<8x32xf32>
    %26 = arith.addf %24, %25 : vector<8x32xf32>
    %c0_11 = arith.constant 0 : index
    %c0_12 = arith.constant 0 : index
    %c0_13 = arith.constant 0 : index
    %27 = vector.load %arg4[%c0_11, %c0_12, %c0_13] : memref<3x32x128xbf16, #tpu.memory_space<vmem>>, vector<1x32x128xbf16>
    %28 = vector.shape_cast %27 : vector<1x32x128xbf16> to vector<32x128xbf16>
    %29 = vector.extract_strided_slice %28 {offsets = [0, 0], sizes = [32, 96], strides = [1, 1]} : vector<32x128xbf16> to vector<32x96xbf16>
    %30 = vector.extract_strided_slice %28 {offsets = [0, 96], sizes = [32, 32], strides = [1, 1]} : vector<32x128xbf16> to vector<32x32xbf16>
    %31 = arith.truncf %26 : vector<8x32xf32> to vector<8x32xbf16>
    %cst_14 = arith.constant dense<0.000000e+00> : vector<8x96xf32>
    %32 = tpu.matmul %31, %29, %cst_14 {dimension_numbers = #tpu.dot_dimension_numbers<[1], [0], [0], [1], [0, 0, 1, 1], [], []>} : vector<8x32xbf16>, vector<32x96xbf16>, vector<8x96xf32> -> vector<8x96xf32>
    %33 = vector.extract_strided_slice %0 {offsets = [3, 0], sizes = [1, 96], strides = [1, 1]} : vector<24x128xf32> to vector<1x96xf32>
    %34 = vector.broadcast %33 : vector<1x96xf32> to vector<8x96xf32>
    %35 = arith.addf %32, %34 : vector<8x96xf32>
    %36 = vector.extract_strided_slice %35 {offsets = [0, 0], sizes = [8, 32], strides = [1, 1]} : vector<8x96xf32> to vector<8x32xf32>
    %37 = vector.extract_strided_slice %36 {offsets = [0, 0], sizes = [8, 16], strides = [1, 1]} : vector<8x32xf32> to vector<8x16xf32>
    %38 = vector.shape_cast %37 : vector<8x16xf32> to vector<1x8x16xf32>
    %39 = vector.extract_strided_slice %36 {offsets = [0, 16], sizes = [8, 16], strides = [1, 1]} : vector<8x32xf32> to vector<8x16xf32>
    %40 = vector.shape_cast %39 : vector<8x16xf32> to vector<1x8x16xf32>
    %41 = tpu.concatenate %38, %40 in 0 : vector<1x8x16xf32>, vector<1x8x16xf32> -> vector<2x8x16xf32>
    %42 = arith.truncf %41 : vector<2x8x16xf32> to vector<2x8x16xbf16>
    %43 = vector.extract_strided_slice %35 {offsets = [0, 32], sizes = [8, 32], strides = [1, 1]} : vector<8x96xf32> to vector<8x32xf32>
    %44 = vector.extract_strided_slice %43 {offsets = [0, 0], sizes = [8, 16], strides = [1, 1]} : vector<8x32xf32> to vector<8x16xf32>
    %45 = vector.shape_cast %44 : vector<8x16xf32> to vector<1x8x16xf32>
    %46 = vector.extract_strided_slice %43 {offsets = [0, 16], sizes = [8, 16], strides = [1, 1]} : vector<8x32xf32> to vector<8x16xf32>
    %47 = vector.shape_cast %46 : vector<8x16xf32> to vector<1x8x16xf32>
    %48 = tpu.concatenate %45, %47 in 0 : vector<1x8x16xf32>, vector<1x8x16xf32> -> vector<2x8x16xf32>
    %49 = arith.truncf %48 : vector<2x8x16xf32> to vector<2x8x16xbf16>
    %50 = vector.extract_strided_slice %35 {offsets = [0, 64], sizes = [8, 32], strides = [1, 1]} : vector<8x96xf32> to vector<8x32xf32>
    %51 = vector.extract_strided_slice %50 {offsets = [0, 0], sizes = [8, 16], strides = [1, 1]} : vector<8x32xf32> to vector<8x16xf32>
    %52 = vector.shape_cast %51 : vector<8x16xf32> to vector<1x8x16xf32>
    %53 = vector.extract_strided_slice %50 {offsets = [0, 16], sizes = [8, 16], strides = [1, 1]} : vector<8x32xf32> to vector<8x16xf32>
    %54 = vector.shape_cast %53 : vector<8x16xf32> to vector<1x8x16xf32>
    %55 = tpu.concatenate %52, %54 in 0 : vector<1x8x16xf32>, vector<1x8x16xf32> -> vector<2x8x16xf32>
    %56 = arith.truncf %55 : vector<2x8x16xf32> to vector<2x8x16xbf16>
    %cst_15 = arith.constant dense<0.000000e+00> : vector<2x8x8xf32>
    %57 = tpu.matmul %42, %49, %cst_15 {dimension_numbers = #tpu.dot_dimension_numbers<[2], [2], [1], [1], [0, 0, 0, 1, 1, 1], [0], [0]>} : vector<2x8x16xbf16>, vector<2x8x16xbf16>, vector<2x8x8xf32> -> vector<2x8x8xf32>
    %58 = vector.shape_cast %2 : vector<1x8xf32> to vector<1x1x8xf32>
    %59 = vector.broadcast %58 : vector<1x1x8xf32> to vector<2x8x8xf32>
    %60 = arith.addf %57, %59 : vector<2x8x8xf32>
    %cst_16 = arith.constant dense<0xFF800000> : vector<2x8xf32>
    %61 = vector.multi_reduction <maximumf>, %60, %cst_16 [2] : vector<2x8x8xf32> to vector<2x8xf32>
    %62 = vector.shape_cast %61 : vector<2x8xf32> to vector<2x8x1xf32>
    %63 = vector.broadcast %62 : vector<2x8x1xf32> to vector<2x8x8xf32>
    %64 = arith.subf %60, %63 : vector<2x8x8xf32>
    %65 = math.exp %64 : vector<2x8x8xf32>
    %cst_17 = arith.constant dense<0.000000e+00> : vector<2x8xf32>
    %66 = vector.multi_reduction <add>, %65, %cst_17 [2] : vector<2x8x8xf32> to vector<2x8xf32>
    %67 = vector.shape_cast %66 : vector<2x8xf32> to vector<2x8x1xf32>
    %68 = tpu.reciprocal %67 {approx = true} : vector<2x8x1xf32> -> vector<2x8x1xf32>
    %69 = vector.broadcast %68 : vector<2x8x1xf32> to vector<2x8x8xf32>
    %70 = arith.mulf %65, %69 : vector<2x8x8xf32>
    %71 = arith.truncf %70 : vector<2x8x8xf32> to vector<2x8x8xbf16>
    %cst_18 = arith.constant dense<0.000000e+00> : vector<2x8x16xf32>
    %72 = tpu.matmul %71, %56, %cst_18 {dimension_numbers = #tpu.dot_dimension_numbers<[2], [1], [1], [2], [0, 0, 0, 1, 1, 2], [0], [0]>} : vector<2x8x8xbf16>, vector<2x8x16xbf16>, vector<2x8x16xf32> -> vector<2x8x16xf32>
    %73 = vector.extract_strided_slice %72 {offsets = [0, 0, 0], sizes = [1, 8, 16], strides = [1, 1, 1]} : vector<2x8x16xf32> to vector<1x8x16xf32>
    %74 = vector.shape_cast %73 : vector<1x8x16xf32> to vector<8x16xf32>
    %75 = vector.extract_strided_slice %72 {offsets = [1, 0, 0], sizes = [1, 8, 16], strides = [1, 1, 1]} : vector<2x8x16xf32> to vector<1x8x16xf32>
    %76 = vector.shape_cast %75 : vector<1x8x16xf32> to vector<8x16xf32>
    %77 = tpu.concatenate %74, %76 in 1 : vector<8x16xf32>, vector<8x16xf32> -> vector<8x32xf32>
    %78 = arith.truncf %77 : vector<8x32xf32> to vector<8x32xbf16>
    %cst_19 = arith.constant dense<0.000000e+00> : vector<8x32xf32>
    %79 = tpu.matmul %78, %30, %cst_19 {dimension_numbers = #tpu.dot_dimension_numbers<[1], [0], [0], [1], [0, 0, 1, 1], [], []>} : vector<8x32xbf16>, vector<32x32xbf16>, vector<8x32xf32> -> vector<8x32xf32>
    %80 = vector.extract_strided_slice %0 {offsets = [4, 0], sizes = [1, 32], strides = [1, 1]} : vector<24x128xf32> to vector<1x32xf32>
    %81 = vector.broadcast %80 : vector<1x32xf32> to vector<8x32xf32>
    %82 = arith.addf %79, %81 : vector<8x32xf32>
    %83 = arith.addf %26, %82 : vector<8x32xf32>
    %84 = vector.extract_strided_slice %0 {offsets = [7, 0], sizes = [1, 32], strides = [1, 1]} : vector<24x128xf32> to vector<1x32xf32>
    %85 = vector.extract_strided_slice %0 {offsets = [8, 0], sizes = [1, 32], strides = [1, 1]} : vector<24x128xf32> to vector<1x32xf32>
    %cst_20 = arith.constant dense<0.000000e+00> : vector<8xf32>
    %86 = vector.multi_reduction <add>, %83, %cst_20 [1] : vector<8x32xf32> to vector<8xf32>
    %87 = vector.shape_cast %86 : vector<8xf32> to vector<8x1xf32>
    %cst_21 = arith.constant 3.125000e-02 : f32
    %88 = vector.broadcast %cst_21 : f32 to vector<8x1xf32>
    %89 = arith.mulf %87, %88 : vector<8x1xf32>
    %90 = vector.broadcast %89 : vector<8x1xf32> to vector<8x32xf32>
    %91 = arith.subf %83, %90 : vector<8x32xf32>
    %92 = arith.mulf %91, %91 : vector<8x32xf32>
    %cst_22 = arith.constant dense<0.000000e+00> : vector<8xf32>
    %93 = vector.multi_reduction <add>, %92, %cst_22 [1] : vector<8x32xf32> to vector<8xf32>
    %94 = vector.shape_cast %93 : vector<8xf32> to vector<8x1xf32>
    %cst_23 = arith.constant 3.125000e-02 : f32
    %95 = vector.broadcast %cst_23 : f32 to vector<8x1xf32>
    %96 = arith.mulf %94, %95 : vector<8x1xf32>
    %cst_24 = arith.constant 9.99999996E-13 : f32
    %97 = vector.broadcast %cst_24 : f32 to vector<8x1xf32>
    %98 = arith.addf %96, %97 : vector<8x1xf32>
    %99 = math.rsqrt %98 : vector<8x1xf32>
    %100 = vector.broadcast %99 : vector<8x1xf32> to vector<8x32xf32>
    %101 = arith.mulf %91, %100 : vector<8x32xf32>
    %102 = vector.broadcast %84 : vector<1x32xf32> to vector<8x32xf32>
    %103 = arith.mulf %101, %102 : vector<8x32xf32>
    %104 = vector.broadcast %85 : vector<1x32xf32> to vector<8x32xf32>
    %105 = arith.addf %103, %104 : vector<8x32xf32>
    %c0_25 = arith.constant 0 : index
    %c0_26 = arith.constant 0 : index
    %c0_27 = arith.constant 0 : index
    %106 = vector.load %arg5[%c0_25, %c0_26, %c0_27] : memref<2x96x128xbf16, #tpu.memory_space<vmem>>, vector<1x96x128xbf16>
    %107 = vector.shape_cast %106 : vector<1x96x128xbf16> to vector<96x128xbf16>
    %108 = vector.extract_strided_slice %107 {offsets = [0, 0], sizes = [32, 64], strides = [1, 1]} : vector<96x128xbf16> to vector<32x64xbf16>
    %109 = vector.extract_strided_slice %107 {offsets = [32, 0], sizes = [64, 32], strides = [1, 1]} : vector<96x128xbf16> to vector<64x32xbf16>
    %110 = arith.truncf %105 : vector<8x32xf32> to vector<8x32xbf16>
    %cst_28 = arith.constant dense<0.000000e+00> : vector<8x64xf32>
    %111 = tpu.matmul %110, %108, %cst_28 {dimension_numbers = #tpu.dot_dimension_numbers<[1], [0], [0], [1], [0, 0, 1, 1], [], []>} : vector<8x32xbf16>, vector<32x64xbf16>, vector<8x64xf32> -> vector<8x64xf32>
    %112 = vector.extract_strided_slice %0 {offsets = [5, 0], sizes = [1, 64], strides = [1, 1]} : vector<24x128xf32> to vector<1x64xf32>
    %113 = vector.broadcast %112 : vector<1x64xf32> to vector<8x64xf32>
    %114 = arith.addf %111, %113 : vector<8x64xf32>
    %cst_29 = arith.constant 5.000000e-01 : f32
    %115 = vector.broadcast %cst_29 : f32 to vector<8x64xf32>
    %116 = arith.mulf %115, %114 : vector<8x64xf32>
    %cst_30 = arith.constant 4.471500e-02 : f32
    %117 = vector.broadcast %cst_30 : f32 to vector<8x64xf32>
    %118 = arith.mulf %117, %114 : vector<8x64xf32>
    %119 = arith.mulf %118, %114 : vector<8x64xf32>
    %120 = arith.mulf %119, %114 : vector<8x64xf32>
    %121 = arith.addf %114, %120 : vector<8x64xf32>
    %cst_31 = arith.constant 0.797884583 : f32
    %122 = vector.broadcast %cst_31 : f32 to vector<8x64xf32>
    %123 = arith.mulf %122, %121 : vector<8x64xf32>
    %124 = math.tanh %123 : vector<8x64xf32>
    %cst_32 = arith.constant 1.000000e+00 : f32
    %125 = vector.broadcast %cst_32 : f32 to vector<8x64xf32>
    %126 = arith.addf %125, %124 : vector<8x64xf32>
    %127 = arith.mulf %116, %126 : vector<8x64xf32>
    %128 = arith.truncf %127 : vector<8x64xf32> to vector<8x64xbf16>
    %cst_33 = arith.constant dense<0.000000e+00> : vector<8x32xf32>
    %129 = tpu.matmul %128, %109, %cst_33 {dimension_numbers = #tpu.dot_dimension_numbers<[1], [0], [0], [1], [0, 0, 1, 1], [], []>} : vector<8x64xbf16>, vector<64x32xbf16>, vector<8x32xf32> -> vector<8x32xf32>
    %130 = vector.extract_strided_slice %0 {offsets = [6, 0], sizes = [1, 32], strides = [1, 1]} : vector<24x128xf32> to vector<1x32xf32>
    %131 = vector.broadcast %130 : vector<1x32xf32> to vector<8x32xf32>
    %132 = arith.addf %129, %131 : vector<8x32xf32>
    %133 = arith.addf %105, %132 : vector<8x32xf32>
    %134 = vector.extract_strided_slice %0 {offsets = [9, 0], sizes = [1, 32], strides = [1, 1]} : vector<24x128xf32> to vector<1x32xf32>
    %135 = vector.extract_strided_slice %0 {offsets = [10, 0], sizes = [1, 32], strides = [1, 1]} : vector<24x128xf32> to vector<1x32xf32>
    %cst_34 = arith.constant dense<0.000000e+00> : vector<8xf32>
    %136 = vector.multi_reduction <add>, %133, %cst_34 [1] : vector<8x32xf32> to vector<8xf32>
    %137 = vector.shape_cast %136 : vector<8xf32> to vector<8x1xf32>
    %cst_35 = arith.constant 3.125000e-02 : f32
    %138 = vector.broadcast %cst_35 : f32 to vector<8x1xf32>
    %139 = arith.mulf %137, %138 : vector<8x1xf32>
    %140 = vector.broadcast %139 : vector<8x1xf32> to vector<8x32xf32>
    %141 = arith.subf %133, %140 : vector<8x32xf32>
    %142 = arith.mulf %141, %141 : vector<8x32xf32>
    %cst_36 = arith.constant dense<0.000000e+00> : vector<8xf32>
    %143 = vector.multi_reduction <add>, %142, %cst_36 [1] : vector<8x32xf32> to vector<8xf32>
    %144 = vector.shape_cast %143 : vector<8xf32> to vector<8x1xf32>
    %cst_37 = arith.constant 3.125000e-02 : f32
    %145 = vector.broadcast %cst_37 : f32 to vector<8x1xf32>
    %146 = arith.mulf %144, %145 : vector<8x1xf32>
    %cst_38 = arith.constant 9.99999996E-13 : f32
    %147 = vector.broadcast %cst_38 : f32 to vector<8x1xf32>
    %148 = arith.addf %146, %147 : vector<8x1xf32>
    %149 = math.rsqrt %148 : vector<8x1xf32>
    %150 = vector.broadcast %149 : vector<8x1xf32> to vector<8x32xf32>
    %151 = arith.mulf %141, %150 : vector<8x32xf32>
    %152 = vector.broadcast %134 : vector<1x32xf32> to vector<8x32xf32>
    %153 = arith.mulf %151, %152 : vector<8x32xf32>
    %154 = vector.broadcast %135 : vector<1x32xf32> to vector<8x32xf32>
    %155 = arith.addf %153, %154 : vector<8x32xf32>
    %c1 = arith.constant 1 : index
    %c0_39 = arith.constant 0 : index
    %c0_40 = arith.constant 0 : index
    %156 = vector.load %arg4[%c1, %c0_39, %c0_40] : memref<3x32x128xbf16, #tpu.memory_space<vmem>>, vector<1x32x128xbf16>
    %157 = vector.shape_cast %156 : vector<1x32x128xbf16> to vector<32x128xbf16>
    %158 = vector.extract_strided_slice %157 {offsets = [0, 0], sizes = [32, 96], strides = [1, 1]} : vector<32x128xbf16> to vector<32x96xbf16>
    %159 = vector.extract_strided_slice %157 {offsets = [0, 96], sizes = [32, 32], strides = [1, 1]} : vector<32x128xbf16> to vector<32x32xbf16>
    %160 = arith.truncf %155 : vector<8x32xf32> to vector<8x32xbf16>
    %cst_41 = arith.constant dense<0.000000e+00> : vector<8x96xf32>
    %161 = tpu.matmul %160, %158, %cst_41 {dimension_numbers = #tpu.dot_dimension_numbers<[1], [0], [0], [1], [0, 0, 1, 1], [], []>} : vector<8x32xbf16>, vector<32x96xbf16>, vector<8x96xf32> -> vector<8x96xf32>
    %162 = vector.extract_strided_slice %0 {offsets = [11, 0], sizes = [1, 96], strides = [1, 1]} : vector<24x128xf32> to vector<1x96xf32>
    %163 = vector.broadcast %162 : vector<1x96xf32> to vector<8x96xf32>
    %164 = arith.addf %161, %163 : vector<8x96xf32>
    %165 = vector.extract_strided_slice %164 {offsets = [0, 0], sizes = [8, 32], strides = [1, 1]} : vector<8x96xf32> to vector<8x32xf32>
    %166 = vector.extract_strided_slice %165 {offsets = [0, 0], sizes = [8, 16], strides = [1, 1]} : vector<8x32xf32> to vector<8x16xf32>
    %167 = vector.shape_cast %166 : vector<8x16xf32> to vector<1x8x16xf32>
    %168 = vector.extract_strided_slice %165 {offsets = [0, 16], sizes = [8, 16], strides = [1, 1]} : vector<8x32xf32> to vector<8x16xf32>
    %169 = vector.shape_cast %168 : vector<8x16xf32> to vector<1x8x16xf32>
    %170 = tpu.concatenate %167, %169 in 0 : vector<1x8x16xf32>, vector<1x8x16xf32> -> vector<2x8x16xf32>
    %171 = arith.truncf %170 : vector<2x8x16xf32> to vector<2x8x16xbf16>
    %172 = vector.extract_strided_slice %164 {offsets = [0, 32], sizes = [8, 32], strides = [1, 1]} : vector<8x96xf32> to vector<8x32xf32>
    %173 = vector.extract_strided_slice %172 {offsets = [0, 0], sizes = [8, 16], strides = [1, 1]} : vector<8x32xf32> to vector<8x16xf32>
    %174 = vector.shape_cast %173 : vector<8x16xf32> to vector<1x8x16xf32>
    %175 = vector.extract_strided_slice %172 {offsets = [0, 16], sizes = [8, 16], strides = [1, 1]} : vector<8x32xf32> to vector<8x16xf32>
    %176 = vector.shape_cast %175 : vector<8x16xf32> to vector<1x8x16xf32>
    %177 = tpu.concatenate %174, %176 in 0 : vector<1x8x16xf32>, vector<1x8x16xf32> -> vector<2x8x16xf32>
    %178 = arith.truncf %177 : vector<2x8x16xf32> to vector<2x8x16xbf16>
    %179 = vector.extract_strided_slice %164 {offsets = [0, 64], sizes = [8, 32], strides = [1, 1]} : vector<8x96xf32> to vector<8x32xf32>
    %180 = vector.extract_strided_slice %179 {offsets = [0, 0], sizes = [8, 16], strides = [1, 1]} : vector<8x32xf32> to vector<8x16xf32>
    %181 = vector.shape_cast %180 : vector<8x16xf32> to vector<1x8x16xf32>
    %182 = vector.extract_strided_slice %179 {offsets = [0, 16], sizes = [8, 16], strides = [1, 1]} : vector<8x32xf32> to vector<8x16xf32>
    %183 = vector.shape_cast %182 : vector<8x16xf32> to vector<1x8x16xf32>
    %184 = tpu.concatenate %181, %183 in 0 : vector<1x8x16xf32>, vector<1x8x16xf32> -> vector<2x8x16xf32>
    %185 = arith.truncf %184 : vector<2x8x16xf32> to vector<2x8x16xbf16>
    %cst_42 = arith.constant dense<0.000000e+00> : vector<2x8x8xf32>
    %186 = tpu.matmul %171, %178, %cst_42 {dimension_numbers = #tpu.dot_dimension_numbers<[2], [2], [1], [1], [0, 0, 0, 1, 1, 1], [0], [0]>} : vector<2x8x16xbf16>, vector<2x8x16xbf16>, vector<2x8x8xf32> -> vector<2x8x8xf32>
    %187 = vector.shape_cast %2 : vector<1x8xf32> to vector<1x1x8xf32>
    %188 = vector.broadcast %187 : vector<1x1x8xf32> to vector<2x8x8xf32>
    %189 = arith.addf %186, %188 : vector<2x8x8xf32>
    %cst_43 = arith.constant dense<0xFF800000> : vector<2x8xf32>
    %190 = vector.multi_reduction <maximumf>, %189, %cst_43 [2] : vector<2x8x8xf32> to vector<2x8xf32>
    %191 = vector.shape_cast %190 : vector<2x8xf32> to vector<2x8x1xf32>
    %192 = vector.broadcast %191 : vector<2x8x1xf32> to vector<2x8x8xf32>
    %193 = arith.subf %189, %192 : vector<2x8x8xf32>
    %194 = math.exp %193 : vector<2x8x8xf32>
    %cst_44 = arith.constant dense<0.000000e+00> : vector<2x8xf32>
    %195 = vector.multi_reduction <add>, %194, %cst_44 [2] : vector<2x8x8xf32> to vector<2x8xf32>
    %196 = vector.shape_cast %195 : vector<2x8xf32> to vector<2x8x1xf32>
    %197 = tpu.reciprocal %196 {approx = true} : vector<2x8x1xf32> -> vector<2x8x1xf32>
    %198 = vector.broadcast %197 : vector<2x8x1xf32> to vector<2x8x8xf32>
    %199 = arith.mulf %194, %198 : vector<2x8x8xf32>
    %200 = arith.truncf %199 : vector<2x8x8xf32> to vector<2x8x8xbf16>
    %cst_45 = arith.constant dense<0.000000e+00> : vector<2x8x16xf32>
    %201 = tpu.matmul %200, %185, %cst_45 {dimension_numbers = #tpu.dot_dimension_numbers<[2], [1], [1], [2], [0, 0, 0, 1, 1, 2], [0], [0]>} : vector<2x8x8xbf16>, vector<2x8x16xbf16>, vector<2x8x16xf32> -> vector<2x8x16xf32>
    %202 = vector.extract_strided_slice %201 {offsets = [0, 0, 0], sizes = [1, 8, 16], strides = [1, 1, 1]} : vector<2x8x16xf32> to vector<1x8x16xf32>
    %203 = vector.shape_cast %202 : vector<1x8x16xf32> to vector<8x16xf32>
    %204 = vector.extract_strided_slice %201 {offsets = [1, 0, 0], sizes = [1, 8, 16], strides = [1, 1, 1]} : vector<2x8x16xf32> to vector<1x8x16xf32>
    %205 = vector.shape_cast %204 : vector<1x8x16xf32> to vector<8x16xf32>
    %206 = tpu.concatenate %203, %205 in 1 : vector<8x16xf32>, vector<8x16xf32> -> vector<8x32xf32>
    %207 = arith.truncf %206 : vector<8x32xf32> to vector<8x32xbf16>
    %cst_46 = arith.constant dense<0.000000e+00> : vector<8x32xf32>
    %208 = tpu.matmul %207, %159, %cst_46 {dimension_numbers = #tpu.dot_dimension_numbers<[1], [0], [0], [1], [0, 0, 1, 1], [], []>} : vector<8x32xbf16>, vector<32x32xbf16>, vector<8x32xf32> -> vector<8x32xf32>
    %209 = vector.extract_strided_slice %0 {offsets = [12, 0], sizes = [1, 32], strides = [1, 1]} : vector<24x128xf32> to vector<1x32xf32>
    %210 = vector.broadcast %209 : vector<1x32xf32> to vector<8x32xf32>
    %211 = arith.addf %208, %210 : vector<8x32xf32>
    %212 = arith.addf %155, %211 : vector<8x32xf32>
    %213 = vector.extract_strided_slice %0 {offsets = [15, 0], sizes = [1, 32], strides = [1, 1]} : vector<24x128xf32> to vector<1x32xf32>
    %214 = vector.extract_strided_slice %0 {offsets = [16, 0], sizes = [1, 32], strides = [1, 1]} : vector<24x128xf32> to vector<1x32xf32>
    %cst_47 = arith.constant dense<0.000000e+00> : vector<8xf32>
    %215 = vector.multi_reduction <add>, %212, %cst_47 [1] : vector<8x32xf32> to vector<8xf32>
    %216 = vector.shape_cast %215 : vector<8xf32> to vector<8x1xf32>
    %cst_48 = arith.constant 3.125000e-02 : f32
    %217 = vector.broadcast %cst_48 : f32 to vector<8x1xf32>
    %218 = arith.mulf %216, %217 : vector<8x1xf32>
    %219 = vector.broadcast %218 : vector<8x1xf32> to vector<8x32xf32>
    %220 = arith.subf %212, %219 : vector<8x32xf32>
    %221 = arith.mulf %220, %220 : vector<8x32xf32>
    %cst_49 = arith.constant dense<0.000000e+00> : vector<8xf32>
    %222 = vector.multi_reduction <add>, %221, %cst_49 [1] : vector<8x32xf32> to vector<8xf32>
    %223 = vector.shape_cast %222 : vector<8xf32> to vector<8x1xf32>
    %cst_50 = arith.constant 3.125000e-02 : f32
    %224 = vector.broadcast %cst_50 : f32 to vector<8x1xf32>
    %225 = arith.mulf %223, %224 : vector<8x1xf32>
    %cst_51 = arith.constant 9.99999996E-13 : f32
    %226 = vector.broadcast %cst_51 : f32 to vector<8x1xf32>
    %227 = arith.addf %225, %226 : vector<8x1xf32>
    %228 = math.rsqrt %227 : vector<8x1xf32>
    %229 = vector.broadcast %228 : vector<8x1xf32> to vector<8x32xf32>
    %230 = arith.mulf %220, %229 : vector<8x32xf32>
    %231 = vector.broadcast %213 : vector<1x32xf32> to vector<8x32xf32>
    %232 = arith.mulf %230, %231 : vector<8x32xf32>
    %233 = vector.broadcast %214 : vector<1x32xf32> to vector<8x32xf32>
    %234 = arith.addf %232, %233 : vector<8x32xf32>
    %c1_52 = arith.constant 1 : index
    %c0_53 = arith.constant 0 : index
    %c0_54 = arith.constant 0 : index
    %235 = vector.load %arg5[%c1_52, %c0_53, %c0_54] : memref<2x96x128xbf16, #tpu.memory_space<vmem>>, vector<1x96x128xbf16>
    %236 = vector.shape_cast %235 : vector<1x96x128xbf16> to vector<96x128xbf16>
    %237 = vector.extract_strided_slice %236 {offsets = [0, 0], sizes = [32, 64], strides = [1, 1]} : vector<96x128xbf16> to vector<32x64xbf16>
    %238 = vector.extract_strided_slice %236 {offsets = [32, 0], sizes = [64, 32], strides = [1, 1]} : vector<96x128xbf16> to vector<64x32xbf16>
    %239 = arith.truncf %234 : vector<8x32xf32> to vector<8x32xbf16>
    %cst_55 = arith.constant dense<0.000000e+00> : vector<8x64xf32>
    %240 = tpu.matmul %239, %237, %cst_55 {dimension_numbers = #tpu.dot_dimension_numbers<[1], [0], [0], [1], [0, 0, 1, 1], [], []>} : vector<8x32xbf16>, vector<32x64xbf16>, vector<8x64xf32> -> vector<8x64xf32>
    %241 = vector.extract_strided_slice %0 {offsets = [13, 0], sizes = [1, 64], strides = [1, 1]} : vector<24x128xf32> to vector<1x64xf32>
    %242 = vector.broadcast %241 : vector<1x64xf32> to vector<8x64xf32>
    %243 = arith.addf %240, %242 : vector<8x64xf32>
    %cst_56 = arith.constant 5.000000e-01 : f32
    %244 = vector.broadcast %cst_56 : f32 to vector<8x64xf32>
    %245 = arith.mulf %244, %243 : vector<8x64xf32>
    %cst_57 = arith.constant 4.471500e-02 : f32
    %246 = vector.broadcast %cst_57 : f32 to vector<8x64xf32>
    %247 = arith.mulf %246, %243 : vector<8x64xf32>
    %248 = arith.mulf %247, %243 : vector<8x64xf32>
    %249 = arith.mulf %248, %243 : vector<8x64xf32>
    %250 = arith.addf %243, %249 : vector<8x64xf32>
    %cst_58 = arith.constant 0.797884583 : f32
    %251 = vector.broadcast %cst_58 : f32 to vector<8x64xf32>
    %252 = arith.mulf %251, %250 : vector<8x64xf32>
    %253 = math.tanh %252 : vector<8x64xf32>
    %cst_59 = arith.constant 1.000000e+00 : f32
    %254 = vector.broadcast %cst_59 : f32 to vector<8x64xf32>
    %255 = arith.addf %254, %253 : vector<8x64xf32>
    %256 = arith.mulf %245, %255 : vector<8x64xf32>
    %257 = arith.truncf %256 : vector<8x64xf32> to vector<8x64xbf16>
    %cst_60 = arith.constant dense<0.000000e+00> : vector<8x32xf32>
    %258 = tpu.matmul %257, %238, %cst_60 {dimension_numbers = #tpu.dot_dimension_numbers<[1], [0], [0], [1], [0, 0, 1, 1], [], []>} : vector<8x64xbf16>, vector<64x32xbf16>, vector<8x32xf32> -> vector<8x32xf32>
    %259 = vector.extract_strided_slice %0 {offsets = [14, 0], sizes = [1, 32], strides = [1, 1]} : vector<24x128xf32> to vector<1x32xf32>
    %260 = vector.broadcast %259 : vector<1x32xf32> to vector<8x32xf32>
    %261 = arith.addf %258, %260 : vector<8x32xf32>
    %262 = arith.addf %234, %261 : vector<8x32xf32>
    %263 = vector.extract_strided_slice %0 {offsets = [17, 0], sizes = [1, 32], strides = [1, 1]} : vector<24x128xf32> to vector<1x32xf32>
    %264 = vector.extract_strided_slice %0 {offsets = [18, 0], sizes = [1, 32], strides = [1, 1]} : vector<24x128xf32> to vector<1x32xf32>
    %cst_61 = arith.constant dense<0.000000e+00> : vector<8xf32>
    %265 = vector.multi_reduction <add>, %262, %cst_61 [1] : vector<8x32xf32> to vector<8xf32>
    %266 = vector.shape_cast %265 : vector<8xf32> to vector<8x1xf32>
    %cst_62 = arith.constant 3.125000e-02 : f32
    %267 = vector.broadcast %cst_62 : f32 to vector<8x1xf32>
    %268 = arith.mulf %266, %267 : vector<8x1xf32>
    %269 = vector.broadcast %268 : vector<8x1xf32> to vector<8x32xf32>
    %270 = arith.subf %262, %269 : vector<8x32xf32>
    %271 = arith.mulf %270, %270 : vector<8x32xf32>
    %cst_63 = arith.constant dense<0.000000e+00> : vector<8xf32>
    %272 = vector.multi_reduction <add>, %271, %cst_63 [1] : vector<8x32xf32> to vector<8xf32>
    %273 = vector.shape_cast %272 : vector<8xf32> to vector<8x1xf32>
    %cst_64 = arith.constant 3.125000e-02 : f32
    %274 = vector.broadcast %cst_64 : f32 to vector<8x1xf32>
    %275 = arith.mulf %273, %274 : vector<8x1xf32>
    %cst_65 = arith.constant 9.99999996E-13 : f32
    %276 = vector.broadcast %cst_65 : f32 to vector<8x1xf32>
    %277 = arith.addf %275, %276 : vector<8x1xf32>
    %278 = math.rsqrt %277 : vector<8x1xf32>
    %279 = vector.broadcast %278 : vector<8x1xf32> to vector<8x32xf32>
    %280 = arith.mulf %270, %279 : vector<8x32xf32>
    %281 = vector.broadcast %263 : vector<1x32xf32> to vector<8x32xf32>
    %282 = arith.mulf %280, %281 : vector<8x32xf32>
    %283 = vector.broadcast %264 : vector<1x32xf32> to vector<8x32xf32>
    %284 = arith.addf %282, %283 : vector<8x32xf32>
    %c2 = arith.constant 2 : index
    %c0_66 = arith.constant 0 : index
    %c0_67 = arith.constant 0 : index
    %285 = vector.load %arg4[%c2, %c0_66, %c0_67] : memref<3x32x128xbf16, #tpu.memory_space<vmem>>, vector<1x32x128xbf16>
    %286 = vector.shape_cast %285 : vector<1x32x128xbf16> to vector<32x128xbf16>
    %287 = arith.truncf %284 : vector<8x32xf32> to vector<8x32xbf16>
    %cst_68 = arith.constant dense<0.000000e+00> : vector<8x128xf32>
    %288 = tpu.matmul %287, %286, %cst_68 {dimension_numbers = #tpu.dot_dimension_numbers<[1], [0], [0], [1], [0, 0, 1, 1], [], []>} : vector<8x32xbf16>, vector<32x128xbf16>, vector<8x128xf32> -> vector<8x128xf32>
    %289 = vector.extract_strided_slice %0 {offsets = [2, 0], sizes = [1, 128], strides = [1, 1]} : vector<24x128xf32> to vector<1x128xf32>
    %290 = vector.broadcast %289 : vector<1x128xf32> to vector<8x128xf32>
    %291 = arith.addf %288, %290 : vector<8x128xf32>
    %c0_69 = arith.constant 0 : index
    %c0_70 = arith.constant 0 : index
    %c0_71 = arith.constant 0 : index
    %292 = vector.load %arg6[%c0_69, %c0_70, %c0_71] : memref<1x8x128xf32, #tpu.memory_space<vmem>>, vector<1x8x128xf32>
    %293 = vector.shape_cast %292 : vector<1x8x128xf32> to vector<8x128xf32>
    %294 = vector.shape_cast %291 : vector<8x128xf32> to vector<1x8x128xf32>
    tpu.vector_store %arg6[%c0_69, %c0_70, %c0_71], %294 {strides = array<i32>} : memref<1x8x128xf32, #tpu.memory_space<vmem>>, vector<1x8x128xf32>,
    return
  }
  func.func @transform_0(%arg0: i32) -> (i32, i32, i32) {
    %c0_i32 = arith.constant 0 : i32
    %c0_i32_0 = arith.constant 0 : i32
    %c0_i32_1 = arith.constant 0 : i32
    return %arg0, %c0_i32, %c0_i32_0 : i32, i32, i32
  }
  func.func @transform_1(%arg0: i32) -> (i32, i32, i32) {
    %c0_i32 = arith.constant 0 : i32
    %c0_i32_0 = arith.constant 0 : i32
    %c0_i32_1 = arith.constant 0 : i32
    return %arg0, %c0_i32, %c0_i32_0 : i32, i32, i32
  }
  func.func @transform_2(%arg0: i32) -> (i32, i32) {
    %c0_i32 = arith.constant 0 : i32
    %c0_i32_0 = arith.constant 0 : i32
    %c0_i32_1 = arith.constant 0 : i32
    return %c0_i32, %c0_i32_0 : i32, i32
  }
  func.func @transform_3(%arg0: i32) -> (i32, i32, i32) {
    %c0_i32 = arith.constant 0 : i32
    %c0_i32_0 = arith.constant 0 : i32
    %c0_i32_1 = arith.constant 0 : i32
    %c0_i32_2 = arith.constant 0 : i32
    return %c0_i32, %c0_i32_0, %c0_i32_1 : i32, i32, i32
  }
  func.func @transform_4(%arg0: i32) -> (i32, i32, i32) {
    %c0_i32 = arith.constant 0 : i32
    %c0_i32_0 = arith.constant 0 : i32
    %c0_i32_1 = arith.constant 0 : i32
    %c0_i32_2 = arith.constant 0 : i32
    return %c0_i32, %c0_i32_0, %c0_i32_1 : i32, i32, i32
  }
  func.func @transform_5(%arg0: i32) -> (i32, i32, i32) {
    %c0_i32 = arith.constant 0 : i32
    %c0_i32_0 = arith.constant 0 : i32
    %c0_i32_1 = arith.constant 0 : i32
    return %arg0, %c0_i32, %c0_i32_0 : i32, i32, i32
  }
}

</mosaic_0001>

<bundles_post_ra>
// kernel: tpu_custom_call.1
= control target key start
LH: loop header
LB: loop body
LE: loop exit
PB: predicated region body
PF: predicated region fallthrough
CT: control target
= control target key end

     0   :  { %s2032_s0 = inlined_call_operand.hbm [shape: f32[2,8,32], index: 0, kind: input, shape index: {}]   ;;  %s2033_s1 = inlined_call_operand.hbm [shape: f32[2,1,8], index: 1, kind: input, shape index: {}]   ;;  %s2034_s2 = inlined_call_operand.hbm [shape: f32[24,128], index: 2, kind: input, shape index: {}]   ;;  %s2035_s3 = inlined_call_operand.hbm [shape: bf16[3,32,128], index: 3, kind: input, shape index: {}]   ;;  %s2036_s4 = inlined_call_operand.hbm [shape: bf16[2,96,128], index: 4, kind: input, shape index: {}]   ;;  %s2037_s5 = inlined_call_operand.hbm [shape: f32[2,8,128], index: 5, kind: output, shape index: {}]  }
   0x1   :  { %2038 = sst [smem:[#allocation18_spill]] %s2034_s2 }
   0x2   :  { %2039 = sst [smem:[#allocation19_spill]] %s2035_s3 }
   0x3   :  { %2040 = sst [smem:[#allocation20_spill]] %s2036_s4 }
   0x4   :  { %10 = vsyncpa [#allocation3], 0 }
   0x5   :  { %12 = vsyncpa [#allocation3 + $0x1], 0 }
   0x6   :  { %13 = vsyncpa [#allocation6], 0 }
   0x7   :  { %15 = vsyncpa [#allocation6 + $0x1], 0 }
   0x8   :  { %16 = vsyncpa [#allocation9], 0 }
   0x9   :  { %17 = vsyncpa [#allocation4], 0 }
   0xa   :  { %19 = vsyncpa [#allocation4 + $0x1], 0  ;;  %s1716_s18 = smov 0   ;;  %s1718_s19 = smov 0  }
   0xb   :  { %s1720_s20 = smov 0   ;;  %s1722_s21 = smov 0  }
   0xc LB: > { %s2041_s2 = sld [smem:[#allocation18_spill]]  ;;  %s1740_s25 = sadd.s32 4294967295, %s1672_s21   ;;  %s1672_s21 = sphi %s1722_s21, %s2057_s21   ;;  %s1668_s20 = sphi %s1720_s20, %s2056_s20   ;;  %s1664_s19 = sphi %s1718_s19, %s2055_s19   ;;  %s1660_s18 = sphi %s1716_s18, %s2054_s18  }
   0xd   : > { %p1198_p0 = scmp.ge.s32.totalorder %s1672_s21, 1  ;;  %p46_p1 = scmp.eq.s32.totalorder %s1740_s25, 0 }
   0xe   : > { %p171_p2 = scmp.lt.s32.totalorder %s1672_s21, 3  ;;  %s1674_s27 = smov [#allocation7]  }
   0xf   : > { %s184_s28 = sshll.u32 %s1674_s27, 4  ;;  %s2043_s3 = sld [smem:[#allocation19_spill]]  ;;  %s185_s28 = int_to_ptr.vmem [resolvable:$true] %s184_s28 }
  0x10   : > { %p1745_p3 = pnand %p1198_p0, %p171_p2  ;;  %s1675_s8 = smov [#allocation8]  }
  0x11   : > { %s198_s9 = sshll.u32 %s1675_s8, 4  ;;  %s1676_s10 = smov 128   ;;  %s199_s9 = int_to_ptr.vmem [resolvable:$true] %s198_s9 }
  0x12   : > { %s182_s24 = sshll.u32 %s2041_s2, 4  ;;  %p1340_p4 = pneg %p1745_p3  ;;  %s183_s24 = int_to_ptr.hbm [resolvable:$true] %s182_s24 }
  0x13   : > { %s1677_s11 = smov 8   ;;  %s1678_s12 = smov 64  }
  0x14   : > { %p1757_p6 = pnand %p1340_p4, %p46_p1  ;;  %s1679_s13 = smov 4  }
  0x15   : > { %s196_s6 = sshll.u32 %s2043_s3, 4  ;;  %s2045_s4 = sld [smem:[#allocation20_spill]]  ;;  %s197_s6 = int_to_ptr.hbm [resolvable:$true] %s196_s6 }
  0x16   : > { %1343 = dma.hbm_to_vmem [thread:$0]  (!%p1757_p6), %s183_s24, 384, %s185_s28, [#allocation6], %s1676_s10, %s1676_s10, %s1677_s11  }
  0x17   : > { %1346 = dma.hbm_to_vmem [thread:$0]  (!%p1757_p6), %s197_s6, 768, %s199_s9, [#allocation9], %s1678_s12, %s1678_s12, %s1679_s13  }
  0x18   : > { %s1680_s17 = smov [#allocation10]   ;;  %s1197_s23 = sadd.s32 4294967294, %s1672_s21  }
  0x19   : > { %s212_s22 = sshll.u32 %s1680_s17, 4  ;;  %s1772_s24 = sadd.s32 1, %s1672_s21   ;;  %s213_s22 = int_to_ptr.vmem [resolvable:$true] %s212_s22 }
  0x1a   : > { %s32_s27 = sadd.s32 1, %s1668_s20  ;;  %s29_s28 = ssub.s32 %s1672_s21, %s1772_s24 }
  0x1b   : > { %s210_s16 = sshll.u32 %s2045_s4, 4  ;;  %p39_p7 = scmp.ne.s32.totalorder %s1668_s20, %s1664_s19  ;;  %s211_s16 = int_to_ptr.hbm [resolvable:$true] %s210_s16 }
  0x1c   : > { %1349 = dma.hbm_to_vmem [thread:$0]  (!%p1757_p6), %s211_s16, 1536, %s213_s22, [#allocation9], %s1678_s12, %s1678_s12, %s1679_s13  }
  0x1d   : > { %p30_p8 = scmp.eq.s32.totalorder %s29_s28, 0  ;;  %p40_p9 = scmp.eq.s32.totalorder %s1672_s21, 0 }
  0x1e   : > { %p45_p10 = scmp.ne.s32.totalorder %s1664_s19, %s1660_s18  ;;  %p158_p11 = scmp.eq.s32.totalorder %s1740_s25, 1 }
  0x1f   : > { %s1784_s29 = scalar_select %p30_p8, %s1668_s20, %s32_s27  }
  0x20   : > { %p1786_p12 = por %p40_p9, %p39_p7  ;;  %p1792_p13 = por %p46_p1, %p45_p10 }
  0x21   : > { %2046 = sst [smem:[#allocation17_spill]] %s1784_s29  ;;  %p1796_p0 = por %p158_p11, %p39_p7 }
  0x22   : > { %p164_p2 = scmp.eq.s32.totalorder %s1197_s23, 1  ;;  %p1364_p4 = scmp.lt.s32.totalorder %s1672_s21, 2 }
  0x23   : > { %s1802_s8 = sand.u32 1, %s1668_s20   ;;  %s1204_s11 = sshll.u32 %s1672_s21, 3 }
  0x24   : > { %p1804_p6 = por %p164_p2, %p45_p10  ;;  %s1203_s10 = sshll.u32 %s1802_s8, 3 }
  0x25   : > { %s234_s14 = scalar_lea.hbm %s2032_s0, %s1204_s11  ;;  %s230_s16 = scalar_lea.vmem [#allocation2], %s1203_s10 }
  0x26   : > { %s236_s15 = sshll.u32 %s234_s14, 4  ;;  %s238_s17 = sshll.u32 %s230_s16, 4  ;;  %s237_s15 = int_to_ptr.hbm [resolvable:$true] %s236_s15  ;;  %s239_s17 = int_to_ptr.vmem [resolvable:$true] %s238_s17 }
  0x27   : > { %p1815_p7 = pnand %p1364_p4, %p1786_p12  ;;  %s245_s23 = sand.u32 1, %s1672_s21  }
  0x28   : > { %s251_s2 = scalar_lea.hbm %s2033_s1, %s1672_s21  ;;  %s227_s3 = scalar_lea.sflag [#allocation3], %s1802_s8 }
  0x29   : > { %s1534_s12 = sshra.s32 %s237_s15, 4  ;;  %p1538_p9 = pneg %p1815_p7  ;;  %s1535_s12 = int_to_ptr.hbm [resolvable:$true] %s1534_s12 }
  0x2a   : > { %s1536_s11 = scalar_lea.hbm %s1535_s12, 8  ;;  %s1541_s13 = scalar_lea.hbm %s2032_s0, 16 }
  0x2b   : > { %p1537_p8 = scmp.ne.s32.totalorder %s1535_s12, %s1536_s11  ;;  %p1542_p12 = scmp.lt.s32.totalorder %s1535_s12, %s2032_s0 }
  0x2c   : > { %p1543_p2 = scmp.lt.s32.totalorder %s1541_s13, %s1536_s11 }
  0x2d   : > { %p1539_p10 = pnand %p1538_p9, %p1537_p8 }
  0x2e   : > { %p1544_p4 = por %p1543_p2, %p1542_p12 }
  0x2f   : > { %p1540_p11 = pneg %p1539_p10 }
  0x31   : > { %p1545_p5 = pnand %p1544_p4, %p1540_p11 }
  0x33   : > { %1548 = shalt.err (!%p1545_p5)
}
  0x34   : > { %1353 = dma.hbm_to_vmem [thread:$0]  (!%p1815_p7), %s237_s15, 128, %s239_s17, %s227_s3  }
  0x35   : > { %s253_s27 = sshll.u32 %s251_s2, 4  ;;  %s248_s28 = scalar_lea.vmem [#allocation5], %s1802_s8  ;;  %s254_s27 = int_to_ptr.hbm [resolvable:$true] %s253_s27 }
  0x36   : > { %s255_s4 = sshll.u32 %s248_s28, 4  ;;  %s246_s30 = scalar_lea.sflag [#allocation6], %s245_s23  ;;  %s256_s4 = int_to_ptr.vmem [resolvable:$true] %s255_s4 }
  0x37   : > { %s1564_s10 = sshra.s32 %s254_s27, 4  ;;  %s1571_s13 = scalar_lea.hbm %s2033_s1, 2  ;;  %s1565_s10 = int_to_ptr.hbm [resolvable:$true] %s1564_s10 }
  0x38   : > { %s1566_s29 = scalar_lea.hbm %s1565_s10, 1  ;;  %p1572_p5 = scmp.lt.s32.totalorder %s1565_s10, %s2033_s1 }
  0x39   : > { %p1567_p8 = scmp.ne.s32.totalorder %s1565_s10, %s1566_s29  ;;  %p1573_p12 = scmp.lt.s32.totalorder %s1571_s13, %s1566_s29 }
  0x3b   : > { %p1569_p10 = pnand %p1567_p8, %p1538_p9  ;;  %p1574_p2 = por %p1573_p12, %p1572_p5 }
  0x3d   : > { %p1570_p11 = pneg %p1569_p10 }
  0x3f   : > { %p1575_p4 = pnand %p1574_p2, %p1570_p11 }
  0x41   : > { %1578 = shalt.err (!%p1575_p4)
}
  0x42   : > { %1356 = dma.hbm_to_vmem [thread:$0]  (!%p1815_p7), %s254_s27, 16, %s256_s4, %s246_s30  }
  0x43   : > { %264 = sbr.rel (%p1745_p3) target bundleno = 4374 (0x1116), region = 40  ;;  %s1853_s2 = sand.u32 (!%p1745_p3), 1, %s1664_s19  }
  0x44   : > { %s1206_s8 = sshll.u32 (!%p1745_p3), %s1853_s2, 3  ;;  %s267_s15 = scalar_lea.sflag (!%p1745_p3), [#allocation3], %s1853_s2 }
  0x45   : > { %s270_s29 = scalar_lea.vmem (!%p1745_p3), [#allocation2], %s1206_s8 }
  0x48   : > { %1639 = dma.done.wait (%p1792_p13), %s267_s15, 128  }
  0x49   : > { %1641 = vsyncadd (%p1792_p13), %s267_s15, 4294967168  ;;  %s276_s4 = sand.u32 1, %s1740_s25   ;;  %s279_s17 = scalar_lea.vmem [#allocation5], %s1853_s2 }
  0x4a   : > { %s277_s26 = scalar_lea.sflag [#allocation6], %s276_s4 }
  0x4b   : > { %1643 = dma.done.wait (%p1792_p13), %s277_s26, 16  }
  0x4c   : > { %1645 = vsyncadd (%p1792_p13), %s277_s26, 4294967280 }
  0x4d   : > { %1647 = dma.done.wait (%p46_p1), [#allocation6], 384  }
  0x4e   : > { %1649 = vsyncadd (%p46_p1), [#allocation6], 4294966912 }
  0x4f   : > { %1651 = dma.done.wait (%p46_p1), [#allocation9], 2304  }
  0x50   : > { %1653 = vsyncadd (%p46_p1), [#allocation9], 4294964992  ;;  %vm332_vm0 = vcmask 261120   ;;  %v331_v0 = vld [vmem:[%s270_s29] sm:$0xff]  ;;  %v1879_v7 = vld [vmem:[#allocation8 + $0x8] sm:$0xff]  ;;  %s1681_s6 = smov 112  }
  0x51   : > { %v333_v1 = vsel %vm332_vm0, %v331_v0, 0.0  ;;  %386 = vmatpush.bf16.msra.mxu0 %v1879_v7  ;;  %v1882_v8 = vld [vmem:[#allocation8] sm:$0xff]  ;;  %v1885_v17 = vld [vmem:[#allocation7] sm:$0xff]  ;;  %s1682_s22 = smov 96   ;;  %vm407_vm4 = vcmask 130048   ;;  %vm451_vm5 = vcmask 64512  }
  0x52   : > { %334 = vadd.xlane.f32.xlu0 %v333_v1  ;;  %v355_v19 = vperm.slane %v1885_v17, 0  ;;  %v357_v22 = vperm.slane %v1885_v17, 1  ;;  %v364_v26 = vperm.slane %v1885_v17, 3  ;;  %v1904_v41 = vld [vmem:[%s279_s17] ss:$0 sm:$0xff]  ;;  %s1683_s23 = smov 64  }
  0x53   : > { %vm481_vm6 = vcmask 1043456   ;;  %s1684_s16 = smov 32   ;;  %s1685_s27 = smov 16   ;;  %vm652_vm10 = vcmask 523264  }
  0x54   : > { %s1301_s28 = sshll.u32 %s1740_s25, 3  ;;  %s325_s11 = scalar_lea.vmem [#allocation11], %s1206_s8 }
  0x55   : > { %387 = vmatpush.bf16.msra.mxu0 %v1882_v8  ;;  %s1075_s12 = scalar_lea.hbm %s2037_s5, %s1301_s28  ;;  %s1077_s13 = sshll.u32 %s325_s11, 4  ;;  %s1078_s13 = int_to_ptr.vmem [resolvable:$true] %s1077_s13 }
  0x56   : > { %s1079_s14 = sshll.u32 %s1075_s12, 4  ;;  %s1065_s3 = scalar_lea.sflag [#allocation4], %s1853_s2  ;;  %s1080_s14 = int_to_ptr.hbm [resolvable:$true] %s1079_s14 }
  0x57   : > { %s1608_s15 = sshra.s32 %s1080_s14, 4  ;;  %s1614_s26 = scalar_lea.hbm %s2037_s5, 16  ;;  %s1609_s15 = int_to_ptr.hbm [resolvable:$true] %s1608_s15 }
  0x58   : > { %s1610_s25 = scalar_lea.hbm %s1609_s15, 8  ;;  %p1615_p7 = scmp.lt.s32.totalorder %s1609_s15, %s2037_s5 }
  0x59   : > { %p1611_p1 = scmp.ne.s32.totalorder %s1609_s15, %s1610_s25  ;;  %p1616_p9 = scmp.lt.s32.totalorder %s1614_s26, %s1610_s25 }
  0x5b   : > { %p1612_p3 = pnand %p1611_p1, %p1796_p0  ;;  %p1617_p8 = por %p1616_p9, %p1615_p7 }
  0x5d   : > { %p1613_p13 = pneg %p1612_p3 }
  0x5f   : > { %p1618_p10 = pnand %p1617_p8, %p1613_p13 }
  0xc5   : > { %v335_v2 = vpop.xlane.xlu0 %334 }
  0xc6   : > { %v336_v3 = vmul.f32 0.03125, %v335_v2 }
  0xc8   : > { %v337_v4 = vsub.f32 %v331_v0, %v336_v3 }
  0xca   : > { %v338_v5 = vmul.f32 %v337_v4, %v337_v4 }
  0xcc   : > { %v339_v6 = vsel %vm332_vm0, %v338_v5, 0.0 }
  0xcd   : > { %340 = vadd.xlane.f32.xlu0 %v339_v6 }
 0x140   : > { %v341_v9 = vpop.xlane.xlu0 %340 }
 0x141   : > { %v342_v10 = vmul.f32 0.03125, %v341_v9 }
 0x143   : > { %v343_v11 = vadd.f32 1e-12, %v342_v10 }
 0x145   : > { %1414 = vrsqrt.f32 %v343_v11  ;;  %vm350_vm2 = vweird.f32 %v343_v11 }
 0x14b   : > { %v1415_v12 = vpop.eup %1414 }
 0x14c   : > { %v345_v13 = vmul.f32 %v1415_v12, %v343_v11  ;;  %vm351_vm1 = vweird.f32 %v1415_v12 }
 0x14d   : > { %vm352_vm3 = vmor %vm350_vm2, %vm351_vm1 }
 0x14e   : > { %v346_v14 = vmul.f32 %v1415_v12, %v345_v13 }
 0x150   : > { %v347_v15 = vmul.f32 0.5, %v346_v14 }
 0x152   : > { %v348_v16 = vsub.f32 1.5, %v347_v15 }
 0x154   : > { %v349_v18 = vmul.f32 %v1415_v12, %v348_v16 }
 0x156   : > { %v353_v20 = vsel %vm352_vm3, %v1415_v12, %v349_v18 }
 0x157   : > { %v354_v21 = vmul.f32 %v353_v20, %v337_v4 }
 0x159   : > { %v356_v23 = vmul.f32 %v355_v19, %v354_v21  ;;  %v525_v19 = vperm.slane %v1885_v17, 4 }
 0x15b   : > { %v1889_v24 = vadd.f32 %v357_v22, %v356_v23 }
 0x15d   : > { %v363_v25 = vpack.c.bf16 %v1889_v24, %v1889_v24 }
 0x15f   : > { %1219 = vmatmul.msk.bf16.vlgmr.msra.gmra.mxu0 %vm332_vm0, %v363_v25 }
 0x1dc   : > { %v389_v27 = vpop.f32.mrf.mxu0 }
 0x1dd   : > { %v390_v28 = vadd.f32 %v389_v27, %v364_v26 }
 0x1df   : > { %v397_v29 = vpack.c.bf16 %v390_v28, %v390_v28  ;;  %394 = vrot.lane.b32.xlu1 %v390_v28, %s1681_s6 }
 0x1e1   : > { %v403_v30 = vunpack.c.l.b16 %v397_v29 }
 0x1e3   : > { %v404_v32 = vpack.c.b16 %v403_v30, %v403_v30  ;;  %v1307_v30 = vld [vmem:[#allocation10 + $0x8] sm:$0xff] }
 0x1e4   : > { %v391_v31 = vpop.f32.mrf.mxu0 }
 0x1e5   : > { %v1306_v31 = vld [vmem:[#allocation10] sm:$0xff] }
 0x1e7   : > { %405 = vrot.lane.b32.xlu1 %v404_v32, %s1682_s22 }
 0x251   : > { %v395_v33 = vpop.permute.xlu1 %394 }
 0x252   : > { %v398_v34 = vpack.c.bf16 %v395_v33, %v395_v33 }
 0x254   : > { %v428_v35 = vunpack.c.l.b16 %v398_v34 }
 0x256   : > { %v429_v36 = vpack.c.b16 %v428_v35, %v428_v35 }
 0x258   : > { %430 = vrot.lane.b32.xlu2 %v429_v36, %s1682_s22 }
 0x259   : > { %v406_v37 = vpop.permute.xlu1 %405 }
 0x25a   : > { %v412_v38 = vsel %vm407_vm4, %v406_v37, 0 }
 0x25b   : > { %421 = vmatpush.bf16.xpose.msra.mxu1 %v412_v38 }
 0x262   : > { %1220 = vmatmul.msk.bf16.vlgmr.msra.gmra.mxu1 %vm407_vm4, %v397_v29 }
 0x263   : > { %610 = vmatpush.bf16.msrb.mxu1 %v1307_v30 }
 0x267   : > { %611 = vmatpush.bf16.msrb.mxu1 %v1306_v31 }
 0x2b2   : > { %v431_v39 = vpop.permute.xlu2 %430 }
 0x2b3   : > { %v436_v40 = vsel %vm407_vm4, %v431_v39, 0 }
 0x2b4   : > { %445 = vmatpush.bf16.xpose.msra.mxu2 %v436_v40  ;;  %v1929_v40 = vld [vmem:[#allocation7 + $0x8] sm:$0xff] }
 0x2bb   : > { %1221 = vmatmul.msk.bf16.vlgmr.msra.gmra.mxu2 %vm407_vm4, %v398_v34 }
 0x2df   : > { %v423_v42 = vpop.f32.mrf.mxu1 }
 0x2e0   : > { %v424_v43 = vadd.f32 %v1904_v41, %v423_v42  ;;  %v571_v42 = vperm.slane %v1885_v17, 7 }
 0x2e2   : > { %v452_v44 = vsel %vm451_vm5, %v424_v43, -inf }
 0x2e3   : > { %453 = vmax.xlane.f32.xlu2 %v452_v44 }
 0x2e7   : > { %v425_v45 = vpop.f32.mrf.mxu1 }
 0x2e8   : > { %v573_v45 = vperm.slane %v1929_v40, 0 }
 0x2fb   : > { %498 = vrot.lane.b32.xlu2 %v429_v36, %s1683_s23 }
 0x33e   : > { %v447_v46 = vpop.f32.mrf.mxu2 }
 0x33f   : > { %v448_v47 = vadd.f32 %v1904_v41, %v447_v46 }
 0x341   : > { %v455_v48 = vsel %vm451_vm5, %v448_v47, -inf }
 0x342   : > { %456 = vmax.xlane.f32.xlu0 %v455_v48 }
 0x346   : > { %v449_v49 = vpop.f32.mrf.mxu2 }
 0x347   : > { %v1311_v49 = vld [vmem:[#allocation10 + $0x28] sm:$0xff] }
 0x348   : > { %660 = vmatpush.bf16.msrb.mxu2 %v1311_v49 }
 0x356   : > { %476 = vrot.lane.b32.xlu0 %v404_v32, %s1683_s23  ;;  %v454_v50 = vpop.xlane.xlu2 %453 }
 0x357   : > { %v458_v51 = vsub.f32 %v424_v43, %v454_v50  ;;  %v1310_v50 = vld [vmem:[#allocation10 + $0x20] sm:$0xff] }
 0x358   : > { %661 = vmatpush.bf16.msrb.mxu2 %v1310_v50 }
 0x359   : > { %v460_v52 = vmul.f32 1.442695, %v458_v51  ;;  %v1309_v51 = vld [vmem:[#allocation10 + $0x18] sm:$0xff] }
 0x35b   : > { %1416 = vpow2.f32 %v460_v52  ;;  %v1308_v52 = vld [vmem:[#allocation10 + $0x10] sm:$0xff] }
 0x35c   : > { %662 = vmatpush.bf16.msrb.mxu2 %v1309_v51 }
 0x35e   : > { %v499_v60 = vpop.permute.xlu2 %498 }
 0x35f   : > { %v504_v63 = vsel %vm481_vm6, %v499_v60, 0 }
 0x360   : > { %663 = vmatpush.bf16.msrb.mxu2 %v1308_v52 }
 0x361   : > { %v1417_v53 = vpop.eup %1416 }
 0x362   : > { %v464_v54 = vsel %vm451_vm5, %v1417_v53, 0.0 }
 0x363   : > { %465 = vadd.xlane.f32.xlu1 %v464_v54 }
 0x37c   : > { %528 = vrot.lane.b32.xlu1 %v1879_v7, %s1684_s16 }
 0x3b5   : > { %v457_v55 = vpop.xlane.xlu0 %456 }
 0x3b6   : > { %v459_v56 = vsub.f32 %v448_v47, %v457_v55 }
 0x3b8   : > { %v462_v57 = vmul.f32 1.442695, %v459_v56 }
 0x3ba   : > { %1418 = vpow2.f32 %v462_v57 }
 0x3c0   : > { %v1419_v58 = vpop.eup %1418 }
 0x3c1   : > { %v467_v59 = vsel %vm451_vm5, %v1419_v58, 0.0 }
 0x3c2   : > { %468 = vadd.xlane.f32.xlu0 %v467_v59 }
 0x3c8   : > { %v477_v61 = vpop.permute.xlu0 %476 }
 0x3c9   : > { %v483_v62 = vsel %vm481_vm6, %v477_v61, 0 }
 0x3ca   : > { %492 = vmatpush.bf16.msra.mxu3 %v483_v62 }
 0x3ce   : > { %513 = vmatpush.bf16.msrb.mxu3 %v504_v63 }
 0x3d6   : > { %v466_v0 = vpop.xlane.xlu1 %465 }
 0x3d7   : > { %1420 = vrcp.f32 %v466_v0 }
 0x3dd   : > { %v1421_v1 = vpop.eup %1420 }
 0x3de   : > { %v472_v2 = vmul.f32 %v1421_v1, %v1417_v53  ;;  %v588_v53 = vperm.slane %v1885_v17, 5 }
 0x3e0   : > { %v474_v3 = vpack.c.bf16 %v472_v2, %v472_v2 }
 0x3e2   : > { %1222 = vmatmul.msk.bf16.vlgmr.msra.gmra.mxu3 %vm451_vm5, %v474_v3  ;;  %v627_v3 = vperm.slane %v1885_v17, 6 }
 0x3ee   : > { %v529_v14 = vpop.permute.xlu1 %528 }
 0x3ef   : > { %541 = vmatpush.bf16.msrb.mxu0 %v529_v14 }
 0x435   : > { %v469_v4 = vpop.xlane.xlu0 %468 }
 0x436   : > { %1422 = vrcp.f32 %v469_v4 }
 0x43c   : > { %v1423_v5 = vpop.eup %1422 }
 0x43d   : > { %v473_v6 = vmul.f32 %v1423_v5, %v1419_v58 }
 0x43f   : > { %v475_v9 = vpack.c.bf16 %v473_v6, %v473_v6 }
 0x441   : > { %1223 = vmatmul.msk.bf16.vlgmr.msrb.gmra.mxu3 %vm451_vm5, %v475_v9 }
 0x465   : > { %v494_v10 = vpop.f32.mrf.mxu3 }
 0x46d   : > { %v496_v11 = vpop.f32.mrf.mxu3 }
 0x4c4   : > { %v515_v12 = vpop.f32.mrf.mxu3 }
 0x4c5   : > { %520 = vrot.lane.b32.xlu2 %v515_v12, %s1685_s27 }
 0x4cc   : > { %v517_v13 = vpop.f32.mrf.mxu3 }
 0x4cd   : > { %526 = vrot.lane.b32.xlu2 %v1882_v8, %s1684_s16 }
 0x51f   : > { %v521_v7 = vpop.permute.xlu2 %520 }
 0x520   : > { %v523_v15 = vsel %vm407_vm4, %v494_v10, %v521_v7 }
 0x521   : > { %v524_v18 = vpack.c.bf16 %v523_v15, %v523_v15  ;;  %v1939_v15 = vld [vmem:[#allocation8 + $0x18] sm:$0xff] }
 0x522   : > { %724 = vmatpush.bf16.msra.mxu3 %v1939_v15 }
 0x527   : > { %v527_v16 = vpop.permute.xlu2 %526 }
 0x528   : > { %542 = vmatpush.bf16.msrb.mxu0 %v527_v16  ;;  %v1942_v16 = vld [vmem:[#allocation8 + $0x10] sm:$0xff] }
 0x529   : > { %725 = vmatpush.bf16.msra.mxu3 %v1942_v16 }
 0x52b   : > { %1224 = vmatmul.msk.bf16.vlgmr.msrb.gmra.mxu0 %vm332_vm0, %v524_v18 }
 0x5a8   : > { %v544_v20 = vpop.f32.mrf.mxu0 }
 0x5a9   : > { %v545_v21 = vadd.f32 %v544_v20, %v525_v19 }
 0x5ab   : > { %v548_v22 = vadd.f32 %v545_v21, %v1889_v24 }
 0x5ad   : > { %v549_v23 = vsel %vm332_vm0, %v548_v22, 0.0 }
 0x5ae   : > { %550 = vadd.xlane.f32.xlu1 %v549_v23 }
 0x5b0   : > { %v546_v8 = vpop.f32.mrf.mxu0 }
 0x621   : > { %v551_v25 = vpop.xlane.xlu1 %550 }
 0x622   : > { %v552_v26 = vmul.f32 0.03125, %v551_v25 }
 0x624   : > { %v553_v27 = vsub.f32 %v548_v22, %v552_v26 }
 0x626   : > { %v554_v28 = vmul.f32 %v553_v27, %v553_v27 }
 0x628   : > { %v555_v29 = vsel %vm332_vm0, %v554_v28, 0.0 }
 0x629   : > { %556 = vadd.xlane.f32.xlu0 %v555_v29  ;;  %v694_v29 = vperm.slane %v1929_v40, 2 }
 0x69c   : > { %v557_v32 = vpop.xlane.xlu0 %556 }
 0x69d   : > { %v558_v33 = vmul.f32 0.03125, %v557_v32 }
 0x69f   : > { %v559_v34 = vadd.f32 1e-12, %v558_v33 }
 0x6a1   : > { %1424 = vrsqrt.f32 %v559_v34  ;;  %vm566_vm8 = vweird.f32 %v559_v34 }
 0x6a7   : > { %v1425_v24 = vpop.eup %1424 }
 0x6a8   : > { %v561_v35 = vmul.f32 %v1425_v24, %v559_v34  ;;  %vm567_vm7 = vweird.f32 %v1425_v24  ;;  %v702_v34 = vperm.slane %v1929_v40, 3 }
 0x6a9   : > { %vm568_vm9 = vmor %vm566_vm8, %vm567_vm7 }
 0x6aa   : > { %v562_v36 = vmul.f32 %v1425_v24, %v561_v35 }
 0x6ac   : > { %v563_v37 = vmul.f32 0.5, %v562_v36 }
 0x6ae   : > { %v564_v38 = vsub.f32 1.5, %v563_v37 }
 0x6b0   : > { %v565_v39 = vmul.f32 %v1425_v24, %v564_v38 }
 0x6b2   : > { %v569_v43 = vsel %vm568_vm9, %v1425_v24, %v565_v39 }
 0x6b3   : > { %v570_v44 = vmul.f32 %v569_v43, %v553_v27  ;;  %v692_v27 = vperm.slane %v1929_v40, 1 }
 0x6b5   : > { %v572_v46 = vmul.f32 %v571_v42, %v570_v44 }
 0x6b7   : > { %v574_v47 = vadd.f32 %v573_v45, %v572_v46 }
 0x6b9   : > { %v587_v48 = vpack.c.bf16 %v574_v47, %v574_v47 }
 0x6bb   : > { %1233 = vmatmul.msk.bf16.vlgmr.msrb.gmra.mxu1 %vm332_vm0, %v587_v48 }
 0x738   : > { %v613_v54 = vpop.f32.mrf.mxu1 }
 0x739   : > { %v614_v55 = vadd.f32 %v613_v54, %v588_v53 }
 0x73b   : > { %v618_v56 = vmul.f32 0.044715, %v614_v55  ;;  %v617_v63 = vmul.f32 0.5, %v614_v55 }
 0x73d   : > { %v619_v57 = vmul.f32 %v618_v56, %v614_v55 }
 0x73f   : > { %v620_v58 = vmul.f32 %v619_v57, %v614_v55 }
 0x740   : > { %v615_v59 = vpop.f32.mrf.mxu1 }
 0x741   : > { %v621_v60 = vadd.f32 %v620_v58, %v614_v55 }
 0x743   : > { %v622_v61 = vmul.f32 0.7978846, %v621_v60 }
 0x745   : > { %1426 = vtanh.f32 %v622_v61 }
 0x74b   : > { %v1427_v62 = vpop.eup %1426 }
 0x74c   : > { %v624_v0 = vadd.f32 1.0, %v1427_v62 }
 0x74e   : > { %v625_v1 = vmul.f32 %v624_v0, %v617_v63 }
 0x750   : > { %v626_v2 = vpack.c.bf16 %v625_v1, %v625_v1 }
 0x752   : > { %1250 = vmatmul.msk.bf16.vlgmr.msrb.gmra.mxu2 %vm652_vm10, %v626_v2 }
 0x7d5   : > { %v665_v4 = vpop.f32.mrf.mxu2 }
 0x7d6   : > { %v666_v5 = vadd.f32 %v665_v4, %v627_v3 }
 0x7d8   : > { %v669_v6 = vadd.f32 %v666_v5, %v574_v47 }
 0x7da   : > { %v670_v9 = vsel %vm332_vm0, %v669_v6, 0.0 }
 0x7db   : > { %671 = vadd.xlane.f32.xlu2 %v670_v9 }
 0x7dd   : > { %v667_v10 = vpop.f32.mrf.mxu2 }
 0x84e   : > { %v672_v11 = vpop.xlane.xlu2 %671 }
 0x84f   : > { %v673_v12 = vmul.f32 0.03125, %v672_v11 }
 0x851   : > { %v674_v13 = vsub.f32 %v669_v6, %v673_v12 }
 0x853   : > { %v675_v14 = vmul.f32 %v674_v13, %v674_v13 }
 0x855   : > { %v676_v7 = vsel %vm332_vm0, %v675_v14, 0.0 }
 0x856   : > { %677 = vadd.xlane.f32.xlu0 %v676_v7 }
 0x8c9   : > { %v678_v18 = vpop.xlane.xlu0 %677 }
 0x8ca   : > { %v679_v19 = vmul.f32 0.03125, %v678_v18 }
 0x8cc   : > { %v680_v20 = vadd.f32 1e-12, %v679_v19 }
 0x8ce   : > { %1428 = vrsqrt.f32 %v680_v20  ;;  %vm687_vm12 = vweird.f32 %v680_v20 }
 0x8d4   : > { %v1429_v21 = vpop.eup %1428 }
 0x8d5   : > { %v682_v22 = vmul.f32 %v1429_v21, %v680_v20  ;;  %vm688_vm11 = vweird.f32 %v1429_v21 }
 0x8d6   : > { %vm689_vm13 = vmor %vm687_vm12, %vm688_vm11 }
 0x8d7   : > { %v683_v23 = vmul.f32 %v1429_v21, %v682_v22 }
 0x8d9   : > { %v684_v8 = vmul.f32 0.5, %v683_v23 }
 0x8db   : > { %v685_v25 = vsub.f32 1.5, %v684_v8 }
 0x8dd   : > { %v686_v26 = vmul.f32 %v1429_v21, %v685_v25 }
 0x8df   : > { %v690_v28 = vsel %vm689_vm13, %v1429_v21, %v686_v26 }
 0x8e0   : > { %v691_v30 = vmul.f32 %v690_v28, %v674_v13 }
 0x8e2   : > { %v693_v31 = vmul.f32 %v692_v27, %v691_v30  ;;  %v857_v27 = vperm.slane %v1929_v40, 4 }
 0x8e4   : > { %v1947_v32 = vadd.f32 %v694_v29, %v693_v31 }
 0x8e6   : > { %v701_v33 = vpack.c.bf16 %v1947_v32, %v1947_v32 }
 0x8e8   : > { %1259 = vmatmul.msk.bf16.vlgmr.msra.gmra.mxu3 %vm332_vm0, %v701_v33 }
 0x96b   : > { %v727_v24 = vpop.f32.mrf.mxu3 }
 0x96c   : > { %v728_v35 = vadd.f32 %v727_v24, %v702_v34 }
 0x96e   : > { %v735_v36 = vpack.c.bf16 %v728_v35, %v728_v35  ;;  %732 = vrot.lane.b32.xlu0 %v728_v35, %s1681_s6 }
 0x970   : > { %v738_v37 = vunpack.c.l.b16 %v735_v36 }
 0x972   : > { %v739_v38 = vpack.c.b16 %v738_v37, %v738_v37  ;;  %v1315_v37 = vld [vmem:[#allocation10 + $0x38] sm:$0xff] }
 0x973   : > { %v729_v39 = vpop.f32.mrf.mxu3 }
 0x974   : > { %740 = vrot.lane.b32.xlu1 %v739_v38, %s1682_s22 }
 0x9e0   : > { %v733_v42 = vpop.permute.xlu0 %732 }
 0x9e1   : > { %v736_v43 = vpack.c.bf16 %v733_v42, %v733_v42 }
 0x9e3   : > { %v762_v44 = vunpack.c.l.b16 %v736_v43 }
 0x9e5   : > { %v763_v45 = vpack.c.b16 %v762_v44, %v762_v44 }
 0x9e6   : > { %v741_v46 = vpop.permute.xlu1 %740 }
 0x9e7   : > { %v746_v47 = vsel %vm407_vm4, %v741_v46, 0  ;;  %764 = vrot.lane.b32.xlu0 %v763_v45, %s1682_s22 }
 0x9e8   : > { %755 = vmatpush.bf16.xpose.msra.mxu0 %v746_v47 }
 0x9ef   : > { %1260 = vmatmul.msk.bf16.vlgmr.msra.gmra.mxu0 %vm407_vm4, %v735_v36 }
 0xa59   : > { %v765_v48 = vpop.permute.xlu0 %764 }
 0xa5a   : > { %v770_v49 = vsel %vm407_vm4, %v765_v48, 0  ;;  %v1983_v48 = vld [vmem:[#allocation7 + $0x10] sm:$0xff] }
 0xa5b   : > { %779 = vmatpush.bf16.xpose.msra.mxu1 %v770_v49 }
 0xa62   : > { %1261 = vmatmul.msk.bf16.vlgmr.msra.gmra.mxu1 %vm407_vm4, %v736_v43 }
 0xa63   : > { %943 = vmatpush.bf16.msrb.mxu1 %v1315_v37 }
 0xa6c   : > { %v757_v50 = vpop.f32.mrf.mxu0 }
 0xa6d   : > { %v758_v51 = vadd.f32 %v1904_v41, %v757_v50  ;;  %v903_v50 = vperm.slane %v1929_v40, 7 }
 0xa6f   : > { %v785_v52 = vsel %vm451_vm5, %v758_v51, -inf }
 0xa70   : > { %786 = vmax.xlane.f32.xlu2 %v785_v52  ;;  %v905_v52 = vperm.slane %v1983_v48, 0 }
 0xa74   : > { %v759_v53 = vpop.f32.mrf.mxu0 }
 0xadf   : > { %v781_v54 = vpop.f32.mrf.mxu1 }
 0xae0   : > { %v782_v55 = vadd.f32 %v1904_v41, %v781_v54 }
 0xae2   : > { %v788_v56 = vsel %vm451_vm5, %v782_v55, -inf }
 0xae3   : > { %789 = vmax.xlane.f32.xlu0 %v788_v56  ;;  %v787_v57 = vpop.xlane.xlu2 %786 }
 0xae4   : > { %v791_v58 = vsub.f32 %v758_v51, %v787_v57  ;;  %v1319_v57 = vld [vmem:[#allocation10 + $0x58] sm:$0xff] }
 0xae6   : > { %v793_v59 = vmul.f32 1.442695, %v791_v58  ;;  %v1318_v58 = vld [vmem:[#allocation10 + $0x50] sm:$0xff] }
 0xae7   : > { %v783_v60 = vpop.f32.mrf.mxu1 }
 0xae8   : > { %1430 = vpow2.f32 %v793_v59  ;;  %v1317_v59 = vld [vmem:[#allocation10 + $0x48] sm:$0xff]  ;;  %v1316_v60 = vld [vmem:[#allocation10 + $0x40] sm:$0xff] }
 0xaee   : > { %v1431_v61 = vpop.eup %1430 }
 0xaef   : > { %v797_v62 = vsel %vm451_vm5, %v1431_v61, 0.0 }
 0xaf0   : > { %798 = vadd.xlane.f32.xlu1 %v797_v62 }
 0xaf7   : > { %860 = vrot.lane.b32.xlu0 %v1939_v15, %s1684_s16 }
 0xb56   : > { %v790_v63 = vpop.xlane.xlu0 %789 }
 0xb57   : > { %v792_v0 = vsub.f32 %v782_v55, %v790_v63 }
 0xb59   : > { %v795_v1 = vmul.f32 1.442695, %v792_v0 }
 0xb5b   : > { %1432 = vpow2.f32 %v795_v1 }
 0xb61   : > { %v1433_v41 = vpop.eup %1432 }
 0xb62   : > { %v800_v2 = vsel %vm451_vm5, %v1433_v41, 0.0 }
 0xb63   : > { %801 = vadd.xlane.f32.xlu2 %v800_v2  ;;  %v799_v4 = vpop.xlane.xlu1 %798 }
 0xb69   : > { %v861_v22 = vpop.permute.xlu0 %860 }
 0xb6a   : > { %873 = vmatpush.bf16.msrb.mxu0 %v861_v22 }
 0xb7b   : > { %830 = vrot.lane.b32.xlu2 %v763_v45, %s1683_s23 }
 0xb83   : > { %809 = vrot.lane.b32.xlu2 %v739_v38, %s1683_s23  ;;  %v1314_v38 = vld [vmem:[#allocation10 + $0x30] sm:$0xff] }
 0xb84   : > { %944 = vmatpush.bf16.msrb.mxu1 %v1314_v38 }
 0xbd6   : > { %v802_v3 = vpop.xlane.xlu2 %801 }
 0xbd7   : > { %1434 = vrcp.f32 %v802_v3 }
 0xbd8   : > { %1436 = vrcp.f32 %v799_v4 }
 0xbdd   : > { %v1435_v5 = vpop.eup %1434 }
 0xbde   : > { %v806_v6 = vmul.f32 %v1435_v5, %v1433_v41  ;;  %v831_v9 = vpop.permute.xlu2 %830  ;;  %v1437_v12 = vpop.eup %1436 }
 0xbdf   : > { %v836_v10 = vsel %vm481_vm6, %v831_v9, 0  ;;  %v805_v13 = vmul.f32 %v1437_v12, %v1431_v61  ;;  %v921_v61 = vperm.slane %v1929_v40, 5  ;;  %v960_v12 = vperm.slane %v1929_v40, 6 }
 0xbe0   : > { %v808_v11 = vpack.c.bf16 %v806_v6, %v806_v6  ;;  %845 = vmatpush.bf16.msrb.mxu3 %v836_v10 }
 0xbe1   : > { %v807_v15 = vpack.c.bf16 %v805_v13, %v805_v13 }
 0xbe3   : > { %1263 = vmatmul.msk.bf16.vlgmr.msrb.gmra.mxu3 %vm451_vm5, %v808_v11 }
 0xbe6   : > { %v810_v14 = vpop.permute.xlu2 %809 }
 0xbe7   : > { %v815_v7 = vsel %vm481_vm6, %v810_v14, 0 }
 0xbe8   : > { %824 = vmatpush.bf16.msra.mxu2 %v815_v7 }
 0xbeb   : > { %1262 = vmatmul.msk.bf16.vlgmr.msra.gmra.mxu2 %vm451_vm5, %v807_v15 }
 0xbec   : > { %992 = vmatpush.bf16.msrb.mxu2 %v1319_v57 }
 0xbf0   : > { %993 = vmatpush.bf16.msrb.mxu2 %v1318_v58 }
 0xbf4   : > { %994 = vmatpush.bf16.msrb.mxu2 %v1317_v59 }
 0xbf8   : > { %995 = vmatpush.bf16.msrb.mxu2 %v1316_v60 }
 0xc66   : > { %v847_v18 = vpop.f32.mrf.mxu3 }
 0xc67   : > { %852 = vrot.lane.b32.xlu2 %v847_v18, %s1685_s27 }
 0xc6e   : > { %v826_v19 = vpop.f32.mrf.mxu2  ;;  %v849_v20 = vpop.f32.mrf.mxu3 }
 0xc6f   : > { %858 = vrot.lane.b32.xlu2 %v1942_v16, %s1684_s16 }
 0xc76   : > { %v828_v21 = vpop.f32.mrf.mxu2 }
 0xcc1   : > { %v853_v23 = vpop.permute.xlu2 %852 }
 0xcc2   : > { %v855_v8 = vsel %vm407_vm4, %v826_v19, %v853_v23 }
 0xcc3   : > { %v856_v26 = vpack.c.bf16 %v855_v8, %v855_v8  ;;  %v1321_v8 = vld [vmem:[#allocation8 + $0x28] sm:$0xff] }
 0xcc4   : > { %1056 = vmatpush.bf16.msra.mxu3 %v1321_v8 }
 0xcc9   : > { %v859_v25 = vpop.permute.xlu2 %858 }
 0xcca   : > { %874 = vmatpush.bf16.msrb.mxu0 %v859_v25  ;;  %v1320_v25 = vld [vmem:[#allocation8 + $0x20] sm:$0xff] }
 0xccb   : > { %1057 = vmatpush.bf16.msra.mxu3 %v1320_v25 }
 0xccd   : > { %1264 = vmatmul.msk.bf16.vlgmr.msrb.gmra.mxu0 %vm332_vm0, %v856_v26 }
 0xd4a   : > { %v876_v28 = vpop.f32.mrf.mxu0 }
 0xd4b   : > { %v877_v29 = vadd.f32 %v876_v28, %v857_v27 }
 0xd4d   : > { %v880_v30 = vadd.f32 %v877_v29, %v1947_v32 }
 0xd4f   : > { %v881_v31 = vsel %vm332_vm0, %v880_v30, 0.0 }
 0xd50   : > { %882 = vadd.xlane.f32.xlu0 %v881_v31 }
 0xd52   : > { %v878_v16 = vpop.f32.mrf.mxu0 }
 0xdc3   : > { %v883_v33 = vpop.xlane.xlu0 %882 }
 0xdc4   : > { %v884_v34 = vmul.f32 0.03125, %v883_v33 }
 0xdc6   : > { %v885_v24 = vsub.f32 %v880_v30, %v884_v34  ;;  %v1024_v34 = vperm.slane %v1983_v48, 1 }
 0xdc8   : > { %v886_v35 = vmul.f32 %v885_v24, %v885_v24 }
 0xdca   : > { %v887_v36 = vsel %vm332_vm0, %v886_v35, 0.0 }
 0xdcb   : > { %888 = vadd.xlane.f32.xlu1 %v887_v36  ;;  %v1026_v36 = vperm.slane %v1983_v48, 2 }
 0xe3e   : > { %v889_v39 = vpop.xlane.xlu1 %888 }
 0xe3f   : > { %v890_v42 = vmul.f32 0.03125, %v889_v39 }
 0xe41   : > { %v891_v43 = vadd.f32 1e-12, %v890_v42  ;;  %v1034_v42 = vperm.slane %v1885_v17, 2 }
 0xe43   : > { %1438 = vrsqrt.f32 %v891_v43  ;;  %vm898_vm15 = vweird.f32 %v891_v43 }
 0xe49   : > { %v1439_v32 = vpop.eup %1438 }
 0xe4a   : > { %v893_v44 = vmul.f32 %v1439_v32, %v891_v43  ;;  %vm899_vm14 = vweird.f32 %v1439_v32 }
 0xe4b   : > { %vm900_vm1 = vmor %vm898_vm15, %vm899_vm14 }
 0xe4c   : > { %v894_v45 = vmul.f32 %v1439_v32, %v893_v44 }
 0xe4e   : > { %v895_v46 = vmul.f32 0.5, %v894_v45 }
 0xe50   : > { %v896_v47 = vsub.f32 1.5, %v895_v46 }
 0xe52   : > { %v897_v49 = vmul.f32 %v1439_v32, %v896_v47 }
 0xe54   : > { %v901_v51 = vsel %vm900_vm1, %v1439_v32, %v897_v49 }
 0xe55   : > { %v902_v53 = vmul.f32 %v901_v51, %v885_v24 }
 0xe57   : > { %v904_v54 = vmul.f32 %v903_v50, %v902_v53 }
 0xe59   : > { %v906_v55 = vadd.f32 %v905_v52, %v904_v54 }
 0xe5b   : > { %v920_v56 = vpack.c.bf16 %v906_v55, %v906_v55 }
 0xe5d   : > { %1273 = vmatmul.msk.bf16.vlgmr.msrb.gmra.mxu1 %vm332_vm0, %v920_v56 }
 0xeda   : > { %v946_v62 = vpop.f32.mrf.mxu1 }
 0xedb   : > { %v947_v63 = vadd.f32 %v946_v62, %v921_v61 }
 0xedd   : > { %v951_v0 = vmul.f32 0.044715, %v947_v63  ;;  %v950_v6 = vmul.f32 0.5, %v947_v63 }
 0xedf   : > { %v952_v1 = vmul.f32 %v951_v0, %v947_v63 }
 0xee1   : > { %v953_v41 = vmul.f32 %v952_v1, %v947_v63 }
 0xee2   : > { %v948_v2 = vpop.f32.mrf.mxu1 }
 0xee3   : > { %v954_v3 = vadd.f32 %v953_v41, %v947_v63 }
 0xee5   : > { %v955_v4 = vmul.f32 0.7978846, %v954_v3 }
 0xee7   : > { %1440 = vtanh.f32 %v955_v4 }
 0xeed   : > { %v1441_v5 = vpop.eup %1440 }
 0xeee   : > { %v957_v9 = vadd.f32 1.0, %v1441_v5 }
 0xef0   : > { %v958_v10 = vmul.f32 %v957_v9, %v950_v6 }
 0xef2   : > { %v959_v11 = vpack.c.bf16 %v958_v10, %v958_v10 }
 0xef4   : > { %1290 = vmatmul.msk.bf16.vlgmr.msrb.gmra.mxu2 %vm652_vm10, %v959_v11 }
 0xf77   : > { %v997_v13 = vpop.f32.mrf.mxu2 }
 0xf78   : > { %v998_v14 = vadd.f32 %v997_v13, %v960_v12 }
 0xf7a   : > { %v1001_v7 = vadd.f32 %v998_v14, %v906_v55 }
 0xf7c   : > { %v1002_v15 = vsel %vm332_vm0, %v1001_v7, 0.0 }
 0xf7d   : > { %1003 = vadd.xlane.f32.xlu2 %v1002_v15 }
 0xf7f   : > { %v999_v18 = vpop.f32.mrf.mxu2 }
 0xff0   : > { %v1004_v19 = vpop.xlane.xlu2 %1003 }
 0xff1   : > { %v1005_v20 = vmul.f32 0.03125, %v1004_v19 }
 0xff3   : > { %v1006_v21 = vsub.f32 %v1001_v7, %v1005_v20 }
 0xff5   : > { %v1007_v22 = vmul.f32 %v1006_v21, %v1006_v21 }
 0xff7   : > { %v1008_v23 = vsel %vm332_vm0, %v1007_v22, 0.0 }
 0xff8   : > { %1009 = vadd.xlane.f32.xlu1 %v1008_v23 }
0x106b   : > { %v1010_v26 = vpop.xlane.xlu1 %1009 }
0x106c   : > { %v1011_v40 = vmul.f32 0.03125, %v1010_v26 }
0x106e   : > { %v1012_v27 = vadd.f32 1e-12, %v1011_v40 }
0x1070   : > { %1442 = vrsqrt.f32 %v1012_v27  ;;  %vm1019_vm3 = vweird.f32 %v1012_v27 }
0x1076   : > { %v1443_v28 = vpop.eup %1442 }
0x1077   : > { %v1014_v29 = vmul.f32 %v1443_v28, %v1012_v27  ;;  %vm1020_vm2 = vweird.f32 %v1443_v28 }
0x1078   : > { %vm1021_vm4 = vmor %vm1019_vm3, %vm1020_vm2 }
0x1079   : > { %v1015_v30 = vmul.f32 %v1443_v28, %v1014_v29 }
0x107b   : > { %v1016_v31 = vmul.f32 0.5, %v1015_v30 }
0x107d   : > { %v1017_v16 = vsub.f32 1.5, %v1016_v31 }
0x107f   : > { %v1018_v33 = vmul.f32 %v1443_v28, %v1017_v16 }
0x1081   : > { %v1022_v24 = vsel %vm1021_vm4, %v1443_v28, %v1018_v33 }
0x1082   : > { %v1023_v35 = vmul.f32 %v1022_v24, %v1006_v21 }
0x1084   : > { %v1025_v37 = vmul.f32 %v1024_v34, %v1023_v35 }
0x1086   : > { %v1027_v38 = vadd.f32 %v1026_v36, %v1025_v37 }
0x1088   : > { %v1033_v39 = vpack.c.bf16 %v1027_v38, %v1027_v38 }
0x108a   : > { %1299 = vmatmul.msk.bf16.vlgmr.msra.gmra.mxu3 %vm332_vm0, %v1033_v39 }
0x110d   : > { %v1059_v43 = vpop.f32.mrf.mxu3 }
0x110e   : > { %v1060_v32 = vadd.f32 %v1059_v43, %v1034_v42 }
0x1110   : > { %1063 = vst [vmem:[%s325_s11] sm:$0xff] %v1060_v32 }
0x1111   : > { %1621 = shalt.err (!%p1618_p10)
}
0x1112   : > { %1338 = dma.vmem_to_hbm [thread:$0]  (%p1796_p0), %s1078_s13, 128, %s1080_s14, %s1065_s3  }
0x1115   : > { %v1061_v17 = vpop.f32.mrf.mxu3 }
0x1116 PF: > { %s1091_s2 = sand.u32 1, %s1660_s18   ;;  %p2052_p11 = scmp.ge.s32.totalorder %s1672_s21, 2 }
0x1117   : > { %s1092_s6 = scalar_lea.sflag [#allocation4], %s1091_s2 }
0x1118   : > { %p1358_p5 = pnand %p2052_p11, %p1804_p6 }
0x111a   : > { %p1359_p12 = pneg %p1358_p5 }
0x111c   : > { %1655 = dma.done.wait (%p1359_p12), %s1092_s6, 128  }
0x111d   : > { %1657 = vsyncadd (%p1359_p12), %s1092_s6, 4294967168  ;;  %s2053_s22 = sld [smem:[#allocation17_spill]]  ;;  %p22_p2 = scmp.ge.s32.totalorder %s1772_s24, 4  }
0x111e   : > { %s2054_s18 = smov %s1664_s19  ;;  %s2055_s19 = smov %s1668_s20 }
0x111f   : > { %s2057_s21 = smov %s1772_s24  ;;  %24 = sbr.rel (!%p22_p2) target bundleno = 12 (0xc), region = 113 }
0x1123   : > { %s2056_s20 = smov %s2053_s22 }
0x1124   :  { %1098 = vsyncpa [#allocation3], 1 }
0x1125   :  { %1100 = vsyncpa [#allocation3 + $0x1], 1 }
0x1126   :  { %1101 = vsyncpa [#allocation6], 1 }
0x1127   :  { %1103 = vsyncpa [#allocation6 + $0x1], 1 }
0x1128   :  { %1104 = vsyncpa [#allocation9], 1 }
0x1129   :  { %1105 = vsyncpa [#allocation4], 1 }
0x112a   :  { %1107 = vsyncpa [#allocation4 + $0x1], 1 }

</bundles_post_ra>
